<compile_context>
chip_gen: v6e
topology: v6e:2x2x1
jax: 0.10.0
libtpu: 0.0.40
codegen_flags: <defaults>
</compile_context>

<pallas_src>
import math

import jax
import jax.numpy as jnp
from jax import lax
from jax.experimental import pallas as pl
from jax.experimental.pallas import tpu as pltpu

# ----------------------------- small config ---------------------------------
B = 2            # batch
N_MELS = 8       # input mel channels
N_FRAMES = 16    # input frames; conv2 stride-2 -> N_CTX tokens
N_STATE = 32     # model width
N_HEAD = 4
HEAD_DIM = N_STATE // N_HEAD
N_LAYER = 2
N_CTX = N_FRAMES // 2
MLP_HIDDEN = 4 * N_STATE
LN_EPS = 1e-5
DTYPE = jnp.float32

BT_FRM = B * N_FRAMES    # 32 : batch-folded conv rows
BT_CTX = B * N_CTX       # 16 : batch-folded transformer tokens
LANE = 128               # lane width of the packed parameter slab
NEG_INF = -1e9


def _gelu(x):
    # TODO(synk): PyTorch F.gelu default is exact erf-GELU; tanh approximation
    # is used for guaranteed Mosaic lowering (difference ~1e-3).
    return jax.nn.gelu(x, approximate=True)


def sinusoids(length, channels, max_timescale=10000.0):
    log_inc = math.log(max_timescale) / (channels // 2 - 1)
    inv = jnp.exp(-log_inc * jnp.arange(channels // 2, dtype=jnp.float32))
    scaled = jnp.arange(length, dtype=jnp.float32)[:, None] * inv[None, :]
    return jnp.concatenate([jnp.sin(scaled), jnp.cos(scaled)], axis=1)


# ------------------ packed parameter slab (one lane-dense input) -------------
def _ceil8(n):
    return ((n + 7) // 8) * 8


def _make_layout():
    entries = [
        ("w1cat", (3 * N_MELS, N_STATE)),        # conv1 weight, im2col layout
        ("b1c",   (1, N_STATE)),
        ("gsel",  (3 * BT_CTX, BT_FRM)),         # conv2 row-gather (prev|ctr|next)
        ("w2c",   (3 * N_STATE, N_STATE)),       # conv2 taps stacked along rows
        ("b2c",   (1, N_STATE)),
        ("pos",   (BT_CTX, N_STATE)),            # pos-emb pre-tiled over batch
        ("hmask", (N_HEAD * BT_CTX, N_STATE)),   # head lane-group mask
        ("abias", (N_HEAD * BT_CTX, BT_CTX)),    # additive batch block mask
        ("pg",    (1, N_STATE)),
        ("pb",    (1, N_STATE)),
    ]
    for l in range(N_LAYER):
        entries += [
            (f"aln_g{l}", (1, N_STATE)),
            (f"aln_b{l}", (1, N_STATE)),
            (f"wqkv{l}",  (N_STATE, 3 * N_STATE)),   # [wq|wk|wv], scale folded
            (f"bqkv{l}",  (1, 3 * N_STATE)),         # [bq|0|bv]
            (f"wo{l}",    (N_STATE, N_STATE)),
            (f"bo{l}",    (1, N_STATE)),
            (f"mln_g{l}", (1, N_STATE)),
            (f"mln_b{l}", (1, N_STATE)),
            (f"wm1{l}",   (N_STATE, MLP_HIDDEN)),
            (f"bm1{l}",   (1, MLP_HIDDEN)),
            (f"wm2{l}",   (MLP_HIDDEN, N_STATE)),
            (f"bm2{l}",   (1, N_STATE)),
        ]
    layout, row = {}, 0
    for name, shp in entries:
        layout[name] = (row, shp)
        row += _ceil8(shp[0])      # every entry starts 8-sublane aligned
    return layout, row


_LAYOUT, _SLAB_ROWS = _make_layout()      # _SLAB_ROWS is a multiple of 8


def pack_params(p):
    """Pack all encoder constants into one (rows, 128) f32 lane-dense slab."""
    f32 = jnp.float32

    # conv2 stride-2 selection (batch-block aware): output row r picks input
    # rows 2r-1 / 2r / 2r+1 within the same batch block (zero row == padding).
    r16 = jnp.arange(BT_CTX)[:, None]
    j32 = jnp.arange(BT_FRM)[None, :]
    s_prev = (j32 == 2 * r16 - 1) & ((r16 % N_CTX) != 0)
    s_ctr = (j32 == 2 * r16)
    s_next = (j32 == 2 * r16 + 1)
    gsel = jnp.concatenate([s_prev, s_ctr, s_next], axis=0).astype(f32)

    # head mask: row 16h+i, col c -> 1 if c belongs to head h.
    hrow = jnp.repeat(jnp.arange(N_HEAD), BT_CTX)[:, None]
    hcol = (jnp.arange(N_STATE) // HEAD_DIM)[None, :]
    hmask = (hrow == hcol).astype(f32)

    # additive attention bias: 0 within the same batch element, -1e9 across.
    tb = jnp.arange(BT_CTX) // N_CTX
    same = tb[:, None] == tb[None, :]
    abias = jnp.tile(jnp.where(same, 0.0, NEG_INF).astype(f32), (N_HEAD, 1))

    vals = {
        "w1cat": p["conv1_w"].reshape(3 * N_MELS, N_STATE),
        "b1c": p["conv1_b"],
        "gsel": gsel,
        "w2c": p["conv2_w"].reshape(3 * N_STATE, N_STATE),
        "b2c": p["conv2_b"],
        "pos": jnp.tile(p["pos_emb"], (B, 1)),
        "hmask": hmask,
        "abias": abias,
        "pg": p["ln_post_g"],
        "pb": p["ln_post_b"],
    }
    for l in range(N_LAYER):
        vals[f"aln_g{l}"] = p["attn_ln_g"][l]
        vals[f"aln_b{l}"] = p["attn_ln_b"][l]
        vals[f"wqkv{l}"] = jnp.concatenate(
            [p["wq"][l], p["wk"][l], p["wv"][l]], axis=1)
        vals[f"bqkv{l}"] = jnp.concatenate(
            [p["bq"][l], jnp.zeros((1, N_STATE), f32), p["bv"][l]], axis=1)
        vals[f"wo{l}"] = p["wo"][l]
        vals[f"bo{l}"] = p["bo"][l]
        vals[f"mln_g{l}"] = p["mlp_ln_g"][l]
        vals[f"mln_b{l}"] = p["mlp_ln_b"][l]
        vals[f"wm1{l}"] = p["w1"][l]
        vals[f"bm1{l}"] = p["b1"][l]
        vals[f"wm2{l}"] = p["w2"][l]
        vals[f"bm2{l}"] = p["b2"][l]

    slab = jnp.zeros((_SLAB_ROWS, LANE), f32)
    for name, (row, shp) in _LAYOUT.items():
        a = vals[name].astype(f32).reshape(shp)
        slab = slab.at[row:row + shp[0], :shp[1]].set(a)
    return slab


# --------------------------- fused encoder kernel ----------------------------
def _encoder_kernel(x_ref, w_ref, out_ref):
    f32 = jnp.float32

    def get(name):                      # static slice of the packed slab
        row, (r, c) = _LAYOUT[name]
        return w_ref[row:row + r, :c]

    # ---- conv1 (k=3, s=1, pad=1): input already im2col'ed -> ONE GEMM ------
    h1 = _gelu(jnp.dot(x_ref[...], get("w1cat"), preferred_element_type=f32)
               + get("b1c"))                                    # (32, 32)

    # ---- conv2 (k=3, s=2, pad=1): 1 gather GEMM + 3 tap GEMMs --------------
    hg = jnp.dot(get("gsel"), h1, preferred_element_type=f32)   # (48, 32)
    w2c = get("w2c")                                            # (96, 32)
    z2 = (jnp.dot(hg[0:BT_CTX], w2c[0:N_STATE],
                  preferred_element_type=f32)
          + jnp.dot(hg[BT_CTX:2 * BT_CTX], w2c[N_STATE:2 * N_STATE],
                    preferred_element_type=f32)
          + jnp.dot(hg[2 * BT_CTX:3 * BT_CTX], w2c[2 * N_STATE:3 * N_STATE],
                    preferred_element_type=f32)
          + get("b2c"))
    xx = _gelu(z2) + get("pos")                                  # (16, 32)

    hmask = get("hmask")                                         # (64, 32)
    abias = get("abias")                                         # (64, 16)

    def ln(v, g, b):
        m = jnp.mean(v, axis=-1, keepdims=True)
        vc = v - m
        var = jnp.mean(vc * vc, axis=-1, keepdims=True)
        return vc * lax.rsqrt(var + LN_EPS) * g + b

    for l in range(N_LAYER):                     # unrolled (N_LAYER = 2)
        # ------------------ self attention (pre-LN) -------------------------
        h = ln(xx, get(f"aln_g{l}"), get(f"aln_b{l}"))
        # fused QKV: scale (HEAD_DIM**-0.25) folded into wq/bq/wk at pack time.
        qkv = (jnp.dot(h, get(f"wqkv{l}"), preferred_element_type=f32)
               + get(f"bqkv{l}"))                                # (16, 96)
        q = qkv[:, 0:N_STATE]
        k = qkv[:, N_STATE:2 * N_STATE]
        v = qkv[:, 2 * N_STATE:3 * N_STATE]

        # all heads at once: q tiled along sublanes, masked to its head block.
        qb = jnp.concatenate([q] * N_HEAD, axis=0) * hmask       # (64, 32)
        s = lax.dot_general(qb, k, (((1,), (1,)), ((), ())),
                            preferred_element_type=f32) + abias  # (64, 16)
        s = s - jnp.max(s, axis=-1, keepdims=True)
        p_ = jnp.exp(s)
        p_ = p_ * pl.reciprocal(jnp.sum(p_, axis=-1, keepdims=True),
                                approx=True)
        r = jnp.dot(p_, v, preferred_element_type=f32) * hmask   # (64, 32)
        att = (r[0:BT_CTX] + r[BT_CTX:2 * BT_CTX]
               + r[2 * BT_CTX:3 * BT_CTX] + r[3 * BT_CTX:4 * BT_CTX])
        xx = xx + jnp.dot(att, get(f"wo{l}"),
                          preferred_element_type=f32) + get(f"bo{l}")

        # --------------------------- MLP (pre-LN) ---------------------------
        h = ln(xx, get(f"mln_g{l}"), get(f"mln_b{l}"))
        h = _gelu(jnp.dot(h, get(f"wm1{l}"), preferred_element_type=f32)
                  + get(f"bm1{l}"))
        xx = xx + jnp.dot(h, get(f"wm2{l}"),
                          preferred_element_type=f32) + get(f"bm2{l}")

    out_ref[...] = ln(xx, get("pg"), get("pb")).astype(out_ref.dtype)


# ------------------------------- wrapper -------------------------------------
def encoder_forward(x_ncl, slab):
    """x_ncl: (B, n_mels, n_frames) NCL like PyTorch Conv1d; slab from pack_params."""
    x_blc = jnp.transpose(x_ncl, (0, 2, 1)).astype(DTYPE)        # (B, L, C)
    # conv1 im2col in the wrapper: (B*L, 3*C) -> conv1 becomes ONE GEMM.
    xp = jnp.pad(x_blc, ((0, 0), (1, 1), (0, 0)))
    xcol = jnp.concatenate([xp[:, k:k + N_FRAMES, :] for k in range(3)],
                           axis=-1).reshape(BT_FRM, 3 * N_MELS)  # (32, 24)

    flops = int(
        2 * BT_FRM * (3 * N_MELS) * N_STATE                      # conv1
        + 2 * (3 * BT_CTX) * BT_FRM * N_STATE                    # conv2 gather
        + 3 * 2 * BT_CTX * N_STATE * N_STATE                     # conv2 taps
        + N_LAYER * (2 * BT_CTX * N_STATE * (3 * N_STATE)        # qkv
                     + 2 * (N_HEAD * BT_CTX) * N_STATE * BT_CTX  # scores
                     + 2 * (N_HEAD * BT_CTX) * BT_CTX * N_STATE  # P@V
                     + 2 * BT_CTX * N_STATE * N_STATE            # out proj
                     + 2 * 2 * BT_CTX * N_STATE * MLP_HIDDEN))   # mlp
    transcendentals = int(BT_FRM * N_STATE + BT_CTX * N_STATE
                          + N_LAYER * (N_HEAD * BT_CTX * BT_CTX
                                       + BT_CTX * MLP_HIDDEN))
    bytes_accessed = int(4 * (BT_FRM * 3 * N_MELS + _SLAB_ROWS * LANE
                              + BT_CTX * N_STATE))

    out = pl.pallas_call(
        _encoder_kernel,
        out_shape=jax.ShapeDtypeStruct((BT_CTX, N_STATE), DTYPE),
        compiler_params=pltpu.CompilerParams(
            vmem_limit_bytes=8 * 1024 * 1024),
        cost_estimate=pl.CostEstimate(flops=flops,
                                      transcendentals=transcendentals,
                                      bytes_accessed=bytes_accessed),
    )(xcol, slab)
    return out.reshape(B, N_CTX, N_STATE)


# --------------------------- pure-JAX reference ------------------------------
def _ref_conv1d_gelu(x_blc, w_kic, bias, stride):
    Bb, L, _ = x_blc.shape
    K = w_kic.shape[0]
    xp = jnp.pad(x_blc, ((0, 0), (1, 1), (0, 0)))
    L_out = (L + 2 - K) // stride + 1
    cols = jnp.stack([xp[:, k:k + stride * L_out:stride, :] for k in range(K)],
                     axis=2)
    y = jnp.einsum("blkc,kcd->bld", cols, w_kic) + bias.reshape(1, 1, -1)
    return _gelu(y)


def _ref_ln(x, g, b):
    m = jnp.mean(x, axis=-1, keepdims=True)
    xc = x - m
    var = jnp.mean(xc * xc, axis=-1, keepdims=True)
    return xc * lax.rsqrt(var + LN_EPS) * g + b


def encoder_reference(x_ncl, p):
    x = jnp.transpose(x_ncl, (0, 2, 1)).astype(DTYPE)
    x = _ref_conv1d_gelu(x, p["conv1_w"], p["conv1_b"], 1)
    x = _ref_conv1d_gelu(x, p["conv2_w"], p["conv2_b"], 2)
    x = x + p["pos_emb"][None]
    for l in range(N_LAYER):
        h = _ref_ln(x, p["attn_ln_g"][l], p["attn_ln_b"][l])
        q = h @ p["wq"][l] + p["bq"][l]
        k = h @ p["wk"][l]
        v = h @ p["wv"][l] + p["bv"][l]

        def split(t):
            return t.reshape(B, N_CTX, N_HEAD, HEAD_DIM).transpose(0, 2, 1, 3)

        s = jnp.einsum("bhqd,bhkd->bhqk", split(q), split(k))
        pm = jax.nn.softmax(s, axis=-1)
        o = jnp.einsum("bhqk,bhkd->bhqd", pm, split(v))
        o = o.transpose(0, 2, 1, 3).reshape(B, N_CTX, N_STATE)
        x = x + o @ p["wo"][l] + p["bo"][l]
        h = _ref_ln(x, p["mlp_ln_g"][l], p["mlp_ln_b"][l])
        h = _gelu(h @ p["w1"][l] + p["b1"][l])
        x = x + h @ p["w2"][l] + p["b2"][l]
    return _ref_ln(x, p["ln_post_g"], p["ln_post_b"])


# ------------------------------- parameters ----------------------------------
def init_params(key):
    def nrm(k, shape, scale=0.02):
        return scale * jax.random.normal(k, shape, DTYPE)

    attn_scale = HEAD_DIM ** -0.25   # folded into q/k projections (Whisper)
    n_rand = 4 + 11 * N_LAYER        # 4 conv draws + 11 draws per layer
    keys = iter(jax.random.split(key, n_rand))

    params = {
        "conv1_w": nrm(next(keys), (3, N_MELS, N_STATE)),
        "conv1_b": nrm(next(keys), (1, N_STATE)),
        "conv2_w": nrm(next(keys), (3, N_STATE, N_STATE)),
        "conv2_b": nrm(next(keys), (1, N_STATE)),
        "pos_emb": sinusoids(N_CTX, N_STATE).astype(DTYPE),
        "ln_post_g": jnp.ones((1, N_STATE), DTYPE),
        "ln_post_b": jnp.zeros((1, N_STATE), DTYPE),
    }

    stacks = {name: [] for name in
              ("attn_ln_g", "attn_ln_b", "wq", "bq", "wk", "wv", "bv",
               "wo", "bo", "mlp_ln_g", "mlp_ln_b", "w1", "b1", "w2", "b2")}
    for _ in range(N_LAYER):
        stacks["attn_ln_g"].append(jnp.ones((1, N_STATE), DTYPE))
        stacks["attn_ln_b"].append(jnp.zeros((1, N_STATE), DTYPE))
        stacks["wq"].append(nrm(next(keys), (N_STATE, N_STATE)) * attn_scale)
        stacks["bq"].append(nrm(next(keys), (1, N_STATE)) * attn_scale)
        stacks["wk"].append(nrm(next(keys), (N_STATE, N_STATE)) * attn_scale)
        stacks["wv"].append(nrm(next(keys), (N_STATE, N_STATE)))
        stacks["bv"].append(nrm(next(keys), (1, N_STATE)))
        stacks["wo"].append(nrm(next(keys), (N_STATE, N_STATE)))
        stacks["bo"].append(nrm(next(keys), (1, N_STATE)))
        stacks["mlp_ln_g"].append(jnp.ones((1, N_STATE), DTYPE))
        stacks["mlp_ln_b"].append(jnp.zeros((1, N_STATE), DTYPE))
        stacks["w1"].append(nrm(next(keys), (N_STATE, MLP_HIDDEN)))
        stacks["b1"].append(nrm(next(keys), (1, MLP_HIDDEN)))
        stacks["w2"].append(nrm(next(keys), (MLP_HIDDEN, N_STATE)))
        stacks["b2"].append(nrm(next(keys), (1, N_STATE)))
    for name, vals in stacks.items():
        params[name] = jnp.stack(vals, axis=0)
    return params


# ---------------------------------- main --------------------------------------
if __name__ == "__main__":
    key = jax.random.PRNGKey(0)
    k_params, k_x = jax.random.split(key)
    params = init_params(k_params)
    slab = pack_params(params)            # one-time lane-dense weight packing

    # mel-spectrogram style input, NCL like PyTorch: (batch, n_mels, n_frames)
    x = jax.random.normal(k_x, (B, N_MELS, N_FRAMES), DTYPE)

    fwd = jax.jit(encoder_forward)
    out = jax.block_until_ready(fwd(x, slab))

    assert out.shape == (B, N_CTX, N_STATE), out.shape
    assert out.dtype == DTYPE
    assert bool(jnp.all(jnp.isfinite(out)))

    ref = encoder_reference(x, params)
    max_err = float(jnp.max(jnp.abs(out - ref)))
    assert max_err < 2e-2, f"mismatch vs reference: max_err={max_err}"

    print("KERNEL_OK")
</pallas_src>

<mosaic_0001>
module attributes {stable_mosaic.version = 11 : i64} {
  func.func @_encoder_kernel(%arg0: memref<32x24xf32, #tpu.memory_space<vmem>>, %arg1: memref<920x128xf32, #tpu.memory_space<vmem>>, %arg2: memref<16x32xf32, #tpu.memory_space<vmem>>) attributes {dimension_semantics = [], scalar_prefetch = 0 : i64, scratch_operands = 0 : i64, tpu.core_type = #tpu.core_type<tc>} {
    %c0 = arith.constant 0 : index
    %c0_0 = arith.constant 0 : index
    %0 = vector.load %arg0[%c0, %c0_0] : memref<32x24xf32, #tpu.memory_space<vmem>>, vector<32x24xf32>
    %c0_1 = arith.constant 0 : index
    %c0_2 = arith.constant 0 : index
    %1 = vector.load %arg1[%c0_1, %c0_2] : memref<920x128xf32, #tpu.memory_space<vmem>>, vector<24x32xf32>
    %cst = arith.constant dense<0.000000e+00> : vector<32x32xf32>
    %2 = tpu.matmul %0, %1, %cst {dimension_numbers = #tpu.dot_dimension_numbers<[1], [0], [0], [1], [0, 0, 1, 1], [], []>} : vector<32x24xf32>, vector<24x32xf32>, vector<32x32xf32> -> vector<32x32xf32>
    %c24 = arith.constant 24 : index
    %c0_3 = arith.constant 0 : index
    %3 = vector.load %arg1[%c24, %c0_3] : memref<920x128xf32, #tpu.memory_space<vmem>>, vector<1x32xf32>
    %4 = vector.broadcast %3 : vector<1x32xf32> to vector<32x32xf32>
    %5 = arith.addf %2, %4 : vector<32x32xf32>
    %6 = arith.mulf %5, %5 : vector<32x32xf32>
    %7 = arith.mulf %5, %6 : vector<32x32xf32>
    %cst_4 = arith.constant 4.471500e-02 : f32
    %8 = vector.broadcast %cst_4 : f32 to vector<32x32xf32>
    %9 = arith.mulf %8, %7 : vector<32x32xf32>
    %10 = arith.addf %5, %9 : vector<32x32xf32>
    %cst_5 = arith.constant 0.797884583 : f32
    %11 = vector.broadcast %cst_5 : f32 to vector<32x32xf32>
    %12 = arith.mulf %11, %10 : vector<32x32xf32>
    %13 = math.tanh %12 : vector<32x32xf32>
    %cst_6 = arith.constant 1.000000e+00 : f32
    %14 = vector.broadcast %cst_6 : f32 to vector<32x32xf32>
    %15 = arith.addf %14, %13 : vector<32x32xf32>
    %cst_7 = arith.constant 5.000000e-01 : f32
    %16 = vector.broadcast %cst_7 : f32 to vector<32x32xf32>
    %17 = arith.mulf %16, %15 : vector<32x32xf32>
    %18 = arith.mulf %5, %17 : vector<32x32xf32>
    %c32 = arith.constant 32 : index
    %c0_8 = arith.constant 0 : index
    %19 = vector.load %arg1[%c32, %c0_8] : memref<920x128xf32, #tpu.memory_space<vmem>>, vector<48x32xf32>
    %cst_9 = arith.constant dense<0.000000e+00> : vector<48x32xf32>
    %20 = tpu.matmul %19, %18, %cst_9 {dimension_numbers = #tpu.dot_dimension_numbers<[1], [0], [0], [1], [0, 0, 1, 1], [], []>} : vector<48x32xf32>, vector<32x32xf32>, vector<48x32xf32> -> vector<48x32xf32>
    %c80 = arith.constant 80 : index
    %c0_10 = arith.constant 0 : index
    %21 = vector.load %arg1[%c80, %c0_10] : memref<920x128xf32, #tpu.memory_space<vmem>>, vector<96x32xf32>
    %22 = vector.extract_strided_slice %20 {offsets = [0, 0], sizes = [16, 32], strides = [1, 1]} : vector<48x32xf32> to vector<16x32xf32>
    %23 = vector.extract_strided_slice %21 {offsets = [0, 0], sizes = [32, 32], strides = [1, 1]} : vector<96x32xf32> to vector<32x32xf32>
    %cst_11 = arith.constant dense<0.000000e+00> : vector<16x32xf32>
    %24 = tpu.matmul %22, %23, %cst_11 {dimension_numbers = #tpu.dot_dimension_numbers<[1], [0], [0], [1], [0, 0, 1, 1], [], []>} : vector<16x32xf32>, vector<32x32xf32>, vector<16x32xf32> -> vector<16x32xf32>
    %25 = vector.extract_strided_slice %20 {offsets = [16, 0], sizes = [16, 32], strides = [1, 1]} : vector<48x32xf32> to vector<16x32xf32>
    %26 = vector.extract_strided_slice %21 {offsets = [32, 0], sizes = [32, 32], strides = [1, 1]} : vector<96x32xf32> to vector<32x32xf32>
    %cst_12 = arith.constant dense<0.000000e+00> : vector<16x32xf32>
    %27 = tpu.matmul %25, %26, %cst_12 {dimension_numbers = #tpu.dot_dimension_numbers<[1], [0], [0], [1], [0, 0, 1, 1], [], []>} : vector<16x32xf32>, vector<32x32xf32>, vector<16x32xf32> -> vector<16x32xf32>
    %28 = arith.addf %24, %27 : vector<16x32xf32>
    %29 = vector.extract_strided_slice %20 {offsets = [32, 0], sizes = [16, 32], strides = [1, 1]} : vector<48x32xf32> to vector<16x32xf32>
    %30 = vector.extract_strided_slice %21 {offsets = [64, 0], sizes = [32, 32], strides = [1, 1]} : vector<96x32xf32> to vector<32x32xf32>
    %cst_13 = arith.constant dense<0.000000e+00> : vector<16x32xf32>
    %31 = tpu.matmul %29, %30, %cst_13 {dimension_numbers = #tpu.dot_dimension_numbers<[1], [0], [0], [1], [0, 0, 1, 1], [], []>} : vector<16x32xf32>, vector<32x32xf32>, vector<16x32xf32> -> vector<16x32xf32>
    %32 = arith.addf %28, %31 : vector<16x32xf32>
    %c176 = arith.constant 176 : index
    %c0_14 = arith.constant 0 : index
    %33 = vector.load %arg1[%c176, %c0_14] : memref<920x128xf32, #tpu.memory_space<vmem>>, vector<1x32xf32>
    %34 = vector.broadcast %33 : vector<1x32xf32> to vector<16x32xf32>
    %35 = arith.addf %32, %34 : vector<16x32xf32>
    %36 = arith.mulf %35, %35 : vector<16x32xf32>
    %37 = arith.mulf %35, %36 : vector<16x32xf32>
    %cst_15 = arith.constant 4.471500e-02 : f32
    %38 = vector.broadcast %cst_15 : f32 to vector<16x32xf32>
    %39 = arith.mulf %38, %37 : vector<16x32xf32>
    %40 = arith.addf %35, %39 : vector<16x32xf32>
    %cst_16 = arith.constant 0.797884583 : f32
    %41 = vector.broadcast %cst_16 : f32 to vector<16x32xf32>
    %42 = arith.mulf %41, %40 : vector<16x32xf32>
    %43 = math.tanh %42 : vector<16x32xf32>
    %cst_17 = arith.constant 1.000000e+00 : f32
    %44 = vector.broadcast %cst_17 : f32 to vector<16x32xf32>
    %45 = arith.addf %44, %43 : vector<16x32xf32>
    %cst_18 = arith.constant 5.000000e-01 : f32
    %46 = vector.broadcast %cst_18 : f32 to vector<16x32xf32>
    %47 = arith.mulf %46, %45 : vector<16x32xf32>
    %48 = arith.mulf %35, %47 : vector<16x32xf32>
    %c184 = arith.constant 184 : index
    %c0_19 = arith.constant 0 : index
    %49 = vector.load %arg1[%c184, %c0_19] : memref<920x128xf32, #tpu.memory_space<vmem>>, vector<16x32xf32>
    %50 = arith.addf %48, %49 : vector<16x32xf32>
    %c200 = arith.constant 200 : index
    %c0_20 = arith.constant 0 : index
    %51 = vector.load %arg1[%c200, %c0_20] : memref<920x128xf32, #tpu.memory_space<vmem>>, vector<64x32xf32>
    %c264 = arith.constant 264 : index
    %c0_21 = arith.constant 0 : index
    %52 = vector.load %arg1[%c264, %c0_21] : memref<920x128xf32, #tpu.memory_space<vmem>>, vector<64x16xf32>
    %c344 = arith.constant 344 : index
    %c0_22 = arith.constant 0 : index
    %53 = vector.load %arg1[%c344, %c0_22] : memref<920x128xf32, #tpu.memory_space<vmem>>, vector<1x32xf32>
    %c352 = arith.constant 352 : index
    %c0_23 = arith.constant 0 : index
    %54 = vector.load %arg1[%c352, %c0_23] : memref<920x128xf32, #tpu.memory_space<vmem>>, vector<1x32xf32>
    %cst_24 = arith.constant dense<0.000000e+00> : vector<16xf32>
    %55 = vector.multi_reduction <add>, %50, %cst_24 [1] : vector<16x32xf32> to vector<16xf32>
    %56 = vector.shape_cast %55 : vector<16xf32> to vector<16x1xf32>
    %cst_25 = arith.constant 3.200000e+01 : f32
    %57 = vector.broadcast %cst_25 : f32 to vector<16x1xf32>
    %58 = arith.divf %56, %57 : vector<16x1xf32>
    %59 = vector.broadcast %58 : vector<16x1xf32> to vector<16x32xf32>
    %60 = arith.subf %50, %59 : vector<16x32xf32>
    %61 = arith.mulf %60, %60 : vector<16x32xf32>
    %cst_26 = arith.constant dense<0.000000e+00> : vector<16xf32>
    %62 = vector.multi_reduction <add>, %61, %cst_26 [1] : vector<16x32xf32> to vector<16xf32>
    %63 = vector.shape_cast %62 : vector<16xf32> to vector<16x1xf32>
    %cst_27 = arith.constant 3.200000e+01 : f32
    %64 = vector.broadcast %cst_27 : f32 to vector<16x1xf32>
    %65 = arith.divf %63, %64 : vector<16x1xf32>
    %cst_28 = arith.constant 9.99999974E-6 : f32
    %66 = vector.broadcast %cst_28 : f32 to vector<16x1xf32>
    %67 = arith.addf %65, %66 : vector<16x1xf32>
    %68 = math.rsqrt %67 : vector<16x1xf32>
    %69 = vector.broadcast %68 : vector<16x1xf32> to vector<16x32xf32>
    %70 = arith.mulf %60, %69 : vector<16x32xf32>
    %71 = vector.broadcast %53 : vector<1x32xf32> to vector<16x32xf32>
    %72 = arith.mulf %70, %71 : vector<16x32xf32>
    %73 = vector.broadcast %54 : vector<1x32xf32> to vector<16x32xf32>
    %74 = arith.addf %72, %73 : vector<16x32xf32>
    %c360 = arith.constant 360 : index
    %c0_29 = arith.constant 0 : index
    %75 = vector.load %arg1[%c360, %c0_29] : memref<920x128xf32, #tpu.memory_space<vmem>>, vector<32x96xf32>
    %cst_30 = arith.constant dense<0.000000e+00> : vector<16x96xf32>
    %76 = tpu.matmul %74, %75, %cst_30 {dimension_numbers = #tpu.dot_dimension_numbers<[1], [0], [0], [1], [0, 0, 1, 1], [], []>} : vector<16x32xf32>, vector<32x96xf32>, vector<16x96xf32> -> vector<16x96xf32>
    %c392 = arith.constant 392 : index
    %c0_31 = arith.constant 0 : index
    %77 = vector.load %arg1[%c392, %c0_31] : memref<920x128xf32, #tpu.memory_space<vmem>>, vector<1x96xf32>
    %78 = vector.broadcast %77 : vector<1x96xf32> to vector<16x96xf32>
    %79 = arith.addf %76, %78 : vector<16x96xf32>
    %80 = vector.extract_strided_slice %79 {offsets = [0, 0], sizes = [16, 32], strides = [1, 1]} : vector<16x96xf32> to vector<16x32xf32>
    %81 = vector.extract_strided_slice %79 {offsets = [0, 32], sizes = [16, 32], strides = [1, 1]} : vector<16x96xf32> to vector<16x32xf32>
    %82 = vector.extract_strided_slice %79 {offsets = [0, 64], sizes = [16, 32], strides = [1, 1]} : vector<16x96xf32> to vector<16x32xf32>
    %83 = tpu.concatenate %80, %80, %80, %80 in 0 : vector<16x32xf32>, vector<16x32xf32>, vector<16x32xf32>, vector<16x32xf32> -> vector<64x32xf32>
    %84 = arith.mulf %83, %51 : vector<64x32xf32>
    %cst_32 = arith.constant dense<0.000000e+00> : vector<64x16xf32>
    %85 = tpu.matmul %84, %81, %cst_32 {dimension_numbers = #tpu.dot_dimension_numbers<[1], [1], [0], [0], [0, 0, 1, 0], [], []>} : vector<64x32xf32>, vector<16x32xf32>, vector<64x16xf32> -> vector<64x16xf32>
    %86 = arith.addf %85, %52 : vector<64x16xf32>
    %cst_33 = arith.constant dense<0xFF800000> : vector<64xf32>
    %87 = vector.multi_reduction <maximumf>, %86, %cst_33 [1] : vector<64x16xf32> to vector<64xf32>
    %88 = vector.shape_cast %87 : vector<64xf32> to vector<64x1xf32>
    %89 = vector.broadcast %88 : vector<64x1xf32> to vector<64x16xf32>
    %90 = arith.subf %86, %89 : vector<64x16xf32>
    %91 = math.exp %90 : vector<64x16xf32>
    %cst_34 = arith.constant dense<0.000000e+00> : vector<64xf32>
    %92 = vector.multi_reduction <add>, %91, %cst_34 [1] : vector<64x16xf32> to vector<64xf32>
    %93 = vector.shape_cast %92 : vector<64xf32> to vector<64x1xf32>
    %94 = tpu.reciprocal %93 {approx = true} : vector<64x1xf32> -> vector<64x1xf32>
    %95 = vector.broadcast %94 : vector<64x1xf32> to vector<64x16xf32>
    %96 = arith.mulf %91, %95 : vector<64x16xf32>
    %cst_35 = arith.constant dense<0.000000e+00> : vector<64x32xf32>
    %97 = tpu.matmul %96, %82, %cst_35 {dimension_numbers = #tpu.dot_dimension_numbers<[1], [0], [0], [1], [0, 0, 1, 1], [], []>} : vector<64x16xf32>, vector<16x32xf32>, vector<64x32xf32> -> vector<64x32xf32>
    %98 = arith.mulf %97, %51 : vector<64x32xf32>
    %99 = vector.extract_strided_slice %98 {offsets = [0, 0], sizes = [16, 32], strides = [1, 1]} : vector<64x32xf32> to vector<16x32xf32>
    %100 = vector.extract_strided_slice %98 {offsets = [16, 0], sizes = [16, 32], strides = [1, 1]} : vector<64x32xf32> to vector<16x32xf32>
    %101 = arith.addf %99, %100 : vector<16x32xf32>
    %102 = vector.extract_strided_slice %98 {offsets = [32, 0], sizes = [16, 32], strides = [1, 1]} : vector<64x32xf32> to vector<16x32xf32>
    %103 = arith.addf %101, %102 : vector<16x32xf32>
    %104 = vector.extract_strided_slice %98 {offsets = [48, 0], sizes = [16, 32], strides = [1, 1]} : vector<64x32xf32> to vector<16x32xf32>
    %105 = arith.addf %103, %104 : vector<16x32xf32>
    %c400 = arith.constant 400 : index
    %c0_36 = arith.constant 0 : index
    %106 = vector.load %arg1[%c400, %c0_36] : memref<920x128xf32, #tpu.memory_space<vmem>>, vector<32x32xf32>
    %cst_37 = arith.constant dense<0.000000e+00> : vector<16x32xf32>
    %107 = tpu.matmul %105, %106, %cst_37 {dimension_numbers = #tpu.dot_dimension_numbers<[1], [0], [0], [1], [0, 0, 1, 1], [], []>} : vector<16x32xf32>, vector<32x32xf32>, vector<16x32xf32> -> vector<16x32xf32>
    %108 = arith.addf %50, %107 : vector<16x32xf32>
    %c432 = arith.constant 432 : index
    %c0_38 = arith.constant 0 : index
    %109 = vector.load %arg1[%c432, %c0_38] : memref<920x128xf32, #tpu.memory_space<vmem>>, vector<1x32xf32>
    %110 = vector.broadcast %109 : vector<1x32xf32> to vector<16x32xf32>
    %111 = arith.addf %108, %110 : vector<16x32xf32>
    %c440 = arith.constant 440 : index
    %c0_39 = arith.constant 0 : index
    %112 = vector.load %arg1[%c440, %c0_39] : memref<920x128xf32, #tpu.memory_space<vmem>>, vector<1x32xf32>
    %c448 = arith.constant 448 : index
    %c0_40 = arith.constant 0 : index
    %113 = vector.load %arg1[%c448, %c0_40] : memref<920x128xf32, #tpu.memory_space<vmem>>, vector<1x32xf32>
    %cst_41 = arith.constant dense<0.000000e+00> : vector<16xf32>
    %114 = vector.multi_reduction <add>, %111, %cst_41 [1] : vector<16x32xf32> to vector<16xf32>
    %115 = vector.shape_cast %114 : vector<16xf32> to vector<16x1xf32>
    %cst_42 = arith.constant 3.200000e+01 : f32
    %116 = vector.broadcast %cst_42 : f32 to vector<16x1xf32>
    %117 = arith.divf %115, %116 : vector<16x1xf32>
    %118 = vector.broadcast %117 : vector<16x1xf32> to vector<16x32xf32>
    %119 = arith.subf %111, %118 : vector<16x32xf32>
    %120 = arith.mulf %119, %119 : vector<16x32xf32>
    %cst_43 = arith.constant dense<0.000000e+00> : vector<16xf32>
    %121 = vector.multi_reduction <add>, %120, %cst_43 [1] : vector<16x32xf32> to vector<16xf32>
    %122 = vector.shape_cast %121 : vector<16xf32> to vector<16x1xf32>
    %cst_44 = arith.constant 3.200000e+01 : f32
    %123 = vector.broadcast %cst_44 : f32 to vector<16x1xf32>
    %124 = arith.divf %122, %123 : vector<16x1xf32>
    %cst_45 = arith.constant 9.99999974E-6 : f32
    %125 = vector.broadcast %cst_45 : f32 to vector<16x1xf32>
    %126 = arith.addf %124, %125 : vector<16x1xf32>
    %127 = math.rsqrt %126 : vector<16x1xf32>
    %128 = vector.broadcast %127 : vector<16x1xf32> to vector<16x32xf32>
    %129 = arith.mulf %119, %128 : vector<16x32xf32>
    %130 = vector.broadcast %112 : vector<1x32xf32> to vector<16x32xf32>
    %131 = arith.mulf %129, %130 : vector<16x32xf32>
    %132 = vector.broadcast %113 : vector<1x32xf32> to vector<16x32xf32>
    %133 = arith.addf %131, %132 : vector<16x32xf32>
    %c456 = arith.constant 456 : index
    %c0_46 = arith.constant 0 : index
    %134 = vector.load %arg1[%c456, %c0_46] : memref<920x128xf32, #tpu.memory_space<vmem>>, vector<32x128xf32>
    %cst_47 = arith.constant dense<0.000000e+00> : vector<16x128xf32>
    %135 = tpu.matmul %133, %134, %cst_47 {dimension_numbers = #tpu.dot_dimension_numbers<[1], [0], [0], [1], [0, 0, 1, 1], [], []>} : vector<16x32xf32>, vector<32x128xf32>, vector<16x128xf32> -> vector<16x128xf32>
    %c488 = arith.constant 488 : index
    %c0_48 = arith.constant 0 : index
    %136 = vector.load %arg1[%c488, %c0_48] : memref<920x128xf32, #tpu.memory_space<vmem>>, vector<1x128xf32>
    %137 = vector.broadcast %136 : vector<1x128xf32> to vector<16x128xf32>
    %138 = arith.addf %135, %137 : vector<16x128xf32>
    %139 = arith.mulf %138, %138 : vector<16x128xf32>
    %140 = arith.mulf %138, %139 : vector<16x128xf32>
    %cst_49 = arith.constant 4.471500e-02 : f32
    %141 = vector.broadcast %cst_49 : f32 to vector<16x128xf32>
    %142 = arith.mulf %141, %140 : vector<16x128xf32>
    %143 = arith.addf %138, %142 : vector<16x128xf32>
    %cst_50 = arith.constant 0.797884583 : f32
    %144 = vector.broadcast %cst_50 : f32 to vector<16x128xf32>
    %145 = arith.mulf %144, %143 : vector<16x128xf32>
    %146 = math.tanh %145 : vector<16x128xf32>
    %cst_51 = arith.constant 1.000000e+00 : f32
    %147 = vector.broadcast %cst_51 : f32 to vector<16x128xf32>
    %148 = arith.addf %147, %146 : vector<16x128xf32>
    %cst_52 = arith.constant 5.000000e-01 : f32
    %149 = vector.broadcast %cst_52 : f32 to vector<16x128xf32>
    %150 = arith.mulf %149, %148 : vector<16x128xf32>
    %151 = arith.mulf %138, %150 : vector<16x128xf32>
    %c496 = arith.constant 496 : index
    %c0_53 = arith.constant 0 : index
    %152 = vector.load %arg1[%c496, %c0_53] : memref<920x128xf32, #tpu.memory_space<vmem>>, vector<128x32xf32>
    %cst_54 = arith.constant dense<0.000000e+00> : vector<16x32xf32>
    %153 = tpu.matmul %151, %152, %cst_54 {dimension_numbers = #tpu.dot_dimension_numbers<[1], [0], [0], [1], [0, 0, 1, 1], [], []>} : vector<16x128xf32>, vector<128x32xf32>, vector<16x32xf32> -> vector<16x32xf32>
    %154 = arith.addf %111, %153 : vector<16x32xf32>
    %c624 = arith.constant 624 : index
    %c0_55 = arith.constant 0 : index
    %155 = vector.load %arg1[%c624, %c0_55] : memref<920x128xf32, #tpu.memory_space<vmem>>, vector<1x32xf32>
    %156 = vector.broadcast %155 : vector<1x32xf32> to vector<16x32xf32>
    %157 = arith.addf %154, %156 : vector<16x32xf32>
    %c632 = arith.constant 632 : index
    %c0_56 = arith.constant 0 : index
    %158 = vector.load %arg1[%c632, %c0_56] : memref<920x128xf32, #tpu.memory_space<vmem>>, vector<1x32xf32>
    %c640 = arith.constant 640 : index
    %c0_57 = arith.constant 0 : index
    %159 = vector.load %arg1[%c640, %c0_57] : memref<920x128xf32, #tpu.memory_space<vmem>>, vector<1x32xf32>
    %cst_58 = arith.constant dense<0.000000e+00> : vector<16xf32>
    %160 = vector.multi_reduction <add>, %157, %cst_58 [1] : vector<16x32xf32> to vector<16xf32>
    %161 = vector.shape_cast %160 : vector<16xf32> to vector<16x1xf32>
    %cst_59 = arith.constant 3.200000e+01 : f32
    %162 = vector.broadcast %cst_59 : f32 to vector<16x1xf32>
    %163 = arith.divf %161, %162 : vector<16x1xf32>
    %164 = vector.broadcast %163 : vector<16x1xf32> to vector<16x32xf32>
    %165 = arith.subf %157, %164 : vector<16x32xf32>
    %166 = arith.mulf %165, %165 : vector<16x32xf32>
    %cst_60 = arith.constant dense<0.000000e+00> : vector<16xf32>
    %167 = vector.multi_reduction <add>, %166, %cst_60 [1] : vector<16x32xf32> to vector<16xf32>
    %168 = vector.shape_cast %167 : vector<16xf32> to vector<16x1xf32>
    %cst_61 = arith.constant 3.200000e+01 : f32
    %169 = vector.broadcast %cst_61 : f32 to vector<16x1xf32>
    %170 = arith.divf %168, %169 : vector<16x1xf32>
    %cst_62 = arith.constant 9.99999974E-6 : f32
    %171 = vector.broadcast %cst_62 : f32 to vector<16x1xf32>
    %172 = arith.addf %170, %171 : vector<16x1xf32>
    %173 = math.rsqrt %172 : vector<16x1xf32>
    %174 = vector.broadcast %173 : vector<16x1xf32> to vector<16x32xf32>
    %175 = arith.mulf %165, %174 : vector<16x32xf32>
    %176 = vector.broadcast %158 : vector<1x32xf32> to vector<16x32xf32>
    %177 = arith.mulf %175, %176 : vector<16x32xf32>
    %178 = vector.broadcast %159 : vector<1x32xf32> to vector<16x32xf32>
    %179 = arith.addf %177, %178 : vector<16x32xf32>
    %c648 = arith.constant 648 : index
    %c0_63 = arith.constant 0 : index
    %180 = vector.load %arg1[%c648, %c0_63] : memref<920x128xf32, #tpu.memory_space<vmem>>, vector<32x96xf32>
    %cst_64 = arith.constant dense<0.000000e+00> : vector<16x96xf32>
    %181 = tpu.matmul %179, %180, %cst_64 {dimension_numbers = #tpu.dot_dimension_numbers<[1], [0], [0], [1], [0, 0, 1, 1], [], []>} : vector<16x32xf32>, vector<32x96xf32>, vector<16x96xf32> -> vector<16x96xf32>
    %c680 = arith.constant 680 : index
    %c0_65 = arith.constant 0 : index
    %182 = vector.load %arg1[%c680, %c0_65] : memref<920x128xf32, #tpu.memory_space<vmem>>, vector<1x96xf32>
    %183 = vector.broadcast %182 : vector<1x96xf32> to vector<16x96xf32>
    %184 = arith.addf %181, %183 : vector<16x96xf32>
    %185 = vector.extract_strided_slice %184 {offsets = [0, 0], sizes = [16, 32], strides = [1, 1]} : vector<16x96xf32> to vector<16x32xf32>
    %186 = vector.extract_strided_slice %184 {offsets = [0, 32], sizes = [16, 32], strides = [1, 1]} : vector<16x96xf32> to vector<16x32xf32>
    %187 = vector.extract_strided_slice %184 {offsets = [0, 64], sizes = [16, 32], strides = [1, 1]} : vector<16x96xf32> to vector<16x32xf32>
    %188 = tpu.concatenate %185, %185, %185, %185 in 0 : vector<16x32xf32>, vector<16x32xf32>, vector<16x32xf32>, vector<16x32xf32> -> vector<64x32xf32>
    %189 = arith.mulf %188, %51 : vector<64x32xf32>
    %cst_66 = arith.constant dense<0.000000e+00> : vector<64x16xf32>
    %190 = tpu.matmul %189, %186, %cst_66 {dimension_numbers = #tpu.dot_dimension_numbers<[1], [1], [0], [0], [0, 0, 1, 0], [], []>} : vector<64x32xf32>, vector<16x32xf32>, vector<64x16xf32> -> vector<64x16xf32>
    %191 = arith.addf %190, %52 : vector<64x16xf32>
    %cst_67 = arith.constant dense<0xFF800000> : vector<64xf32>
    %192 = vector.multi_reduction <maximumf>, %191, %cst_67 [1] : vector<64x16xf32> to vector<64xf32>
    %193 = vector.shape_cast %192 : vector<64xf32> to vector<64x1xf32>
    %194 = vector.broadcast %193 : vector<64x1xf32> to vector<64x16xf32>
    %195 = arith.subf %191, %194 : vector<64x16xf32>
    %196 = math.exp %195 : vector<64x16xf32>
    %cst_68 = arith.constant dense<0.000000e+00> : vector<64xf32>
    %197 = vector.multi_reduction <add>, %196, %cst_68 [1] : vector<64x16xf32> to vector<64xf32>
    %198 = vector.shape_cast %197 : vector<64xf32> to vector<64x1xf32>
    %199 = tpu.reciprocal %198 {approx = true} : vector<64x1xf32> -> vector<64x1xf32>
    %200 = vector.broadcast %199 : vector<64x1xf32> to vector<64x16xf32>
    %201 = arith.mulf %196, %200 : vector<64x16xf32>
    %cst_69 = arith.constant dense<0.000000e+00> : vector<64x32xf32>
    %202 = tpu.matmul %201, %187, %cst_69 {dimension_numbers = #tpu.dot_dimension_numbers<[1], [0], [0], [1], [0, 0, 1, 1], [], []>} : vector<64x16xf32>, vector<16x32xf32>, vector<64x32xf32> -> vector<64x32xf32>
    %203 = arith.mulf %202, %51 : vector<64x32xf32>
    %204 = vector.extract_strided_slice %203 {offsets = [0, 0], sizes = [16, 32], strides = [1, 1]} : vector<64x32xf32> to vector<16x32xf32>
    %205 = vector.extract_strided_slice %203 {offsets = [16, 0], sizes = [16, 32], strides = [1, 1]} : vector<64x32xf32> to vector<16x32xf32>
    %206 = arith.addf %204, %205 : vector<16x32xf32>
    %207 = vector.extract_strided_slice %203 {offsets = [32, 0], sizes = [16, 32], strides = [1, 1]} : vector<64x32xf32> to vector<16x32xf32>
    %208 = arith.addf %206, %207 : vector<16x32xf32>
    %209 = vector.extract_strided_slice %203 {offsets = [48, 0], sizes = [16, 32], strides = [1, 1]} : vector<64x32xf32> to vector<16x32xf32>
    %210 = arith.addf %208, %209 : vector<16x32xf32>
    %c688 = arith.constant 688 : index
    %c0_70 = arith.constant 0 : index
    %211 = vector.load %arg1[%c688, %c0_70] : memref<920x128xf32, #tpu.memory_space<vmem>>, vector<32x32xf32>
    %cst_71 = arith.constant dense<0.000000e+00> : vector<16x32xf32>
    %212 = tpu.matmul %210, %211, %cst_71 {dimension_numbers = #tpu.dot_dimension_numbers<[1], [0], [0], [1], [0, 0, 1, 1], [], []>} : vector<16x32xf32>, vector<32x32xf32>, vector<16x32xf32> -> vector<16x32xf32>
    %213 = arith.addf %157, %212 : vector<16x32xf32>
    %c720 = arith.constant 720 : index
    %c0_72 = arith.constant 0 : index
    %214 = vector.load %arg1[%c720, %c0_72] : memref<920x128xf32, #tpu.memory_space<vmem>>, vector<1x32xf32>
    %215 = vector.broadcast %214 : vector<1x32xf32> to vector<16x32xf32>
    %216 = arith.addf %213, %215 : vector<16x32xf32>
    %c728 = arith.constant 728 : index
    %c0_73 = arith.constant 0 : index
    %217 = vector.load %arg1[%c728, %c0_73] : memref<920x128xf32, #tpu.memory_space<vmem>>, vector<1x32xf32>
    %c736 = arith.constant 736 : index
    %c0_74 = arith.constant 0 : index
    %218 = vector.load %arg1[%c736, %c0_74] : memref<920x128xf32, #tpu.memory_space<vmem>>, vector<1x32xf32>
    %cst_75 = arith.constant dense<0.000000e+00> : vector<16xf32>
    %219 = vector.multi_reduction <add>, %216, %cst_75 [1] : vector<16x32xf32> to vector<16xf32>
    %220 = vector.shape_cast %219 : vector<16xf32> to vector<16x1xf32>
    %cst_76 = arith.constant 3.200000e+01 : f32
    %221 = vector.broadcast %cst_76 : f32 to vector<16x1xf32>
    %222 = arith.divf %220, %221 : vector<16x1xf32>
    %223 = vector.broadcast %222 : vector<16x1xf32> to vector<16x32xf32>
    %224 = arith.subf %216, %223 : vector<16x32xf32>
    %225 = arith.mulf %224, %224 : vector<16x32xf32>
    %cst_77 = arith.constant dense<0.000000e+00> : vector<16xf32>
    %226 = vector.multi_reduction <add>, %225, %cst_77 [1] : vector<16x32xf32> to vector<16xf32>
    %227 = vector.shape_cast %226 : vector<16xf32> to vector<16x1xf32>
    %cst_78 = arith.constant 3.200000e+01 : f32
    %228 = vector.broadcast %cst_78 : f32 to vector<16x1xf32>
    %229 = arith.divf %227, %228 : vector<16x1xf32>
    %cst_79 = arith.constant 9.99999974E-6 : f32
    %230 = vector.broadcast %cst_79 : f32 to vector<16x1xf32>
    %231 = arith.addf %229, %230 : vector<16x1xf32>
    %232 = math.rsqrt %231 : vector<16x1xf32>
    %233 = vector.broadcast %232 : vector<16x1xf32> to vector<16x32xf32>
    %234 = arith.mulf %224, %233 : vector<16x32xf32>
    %235 = vector.broadcast %217 : vector<1x32xf32> to vector<16x32xf32>
    %236 = arith.mulf %234, %235 : vector<16x32xf32>
    %237 = vector.broadcast %218 : vector<1x32xf32> to vector<16x32xf32>
    %238 = arith.addf %236, %237 : vector<16x32xf32>
    %c744 = arith.constant 744 : index
    %c0_80 = arith.constant 0 : index
    %239 = vector.load %arg1[%c744, %c0_80] : memref<920x128xf32, #tpu.memory_space<vmem>>, vector<32x128xf32>
    %cst_81 = arith.constant dense<0.000000e+00> : vector<16x128xf32>
    %240 = tpu.matmul %238, %239, %cst_81 {dimension_numbers = #tpu.dot_dimension_numbers<[1], [0], [0], [1], [0, 0, 1, 1], [], []>} : vector<16x32xf32>, vector<32x128xf32>, vector<16x128xf32> -> vector<16x128xf32>
    %c776 = arith.constant 776 : index
    %c0_82 = arith.constant 0 : index
    %241 = vector.load %arg1[%c776, %c0_82] : memref<920x128xf32, #tpu.memory_space<vmem>>, vector<1x128xf32>
    %242 = vector.broadcast %241 : vector<1x128xf32> to vector<16x128xf32>
    %243 = arith.addf %240, %242 : vector<16x128xf32>
    %244 = arith.mulf %243, %243 : vector<16x128xf32>
    %245 = arith.mulf %243, %244 : vector<16x128xf32>
    %cst_83 = arith.constant 4.471500e-02 : f32
    %246 = vector.broadcast %cst_83 : f32 to vector<16x128xf32>
    %247 = arith.mulf %246, %245 : vector<16x128xf32>
    %248 = arith.addf %243, %247 : vector<16x128xf32>
    %cst_84 = arith.constant 0.797884583 : f32
    %249 = vector.broadcast %cst_84 : f32 to vector<16x128xf32>
    %250 = arith.mulf %249, %248 : vector<16x128xf32>
    %251 = math.tanh %250 : vector<16x128xf32>
    %cst_85 = arith.constant 1.000000e+00 : f32
    %252 = vector.broadcast %cst_85 : f32 to vector<16x128xf32>
    %253 = arith.addf %252, %251 : vector<16x128xf32>
    %cst_86 = arith.constant 5.000000e-01 : f32
    %254 = vector.broadcast %cst_86 : f32 to vector<16x128xf32>
    %255 = arith.mulf %254, %253 : vector<16x128xf32>
    %256 = arith.mulf %243, %255 : vector<16x128xf32>
    %c784 = arith.constant 784 : index
    %c0_87 = arith.constant 0 : index
    %257 = vector.load %arg1[%c784, %c0_87] : memref<920x128xf32, #tpu.memory_space<vmem>>, vector<128x32xf32>
    %cst_88 = arith.constant dense<0.000000e+00> : vector<16x32xf32>
    %258 = tpu.matmul %256, %257, %cst_88 {dimension_numbers = #tpu.dot_dimension_numbers<[1], [0], [0], [1], [0, 0, 1, 1], [], []>} : vector<16x128xf32>, vector<128x32xf32>, vector<16x32xf32> -> vector<16x32xf32>
    %259 = arith.addf %216, %258 : vector<16x32xf32>
    %c912 = arith.constant 912 : index
    %c0_89 = arith.constant 0 : index
    %260 = vector.load %arg1[%c912, %c0_89] : memref<920x128xf32, #tpu.memory_space<vmem>>, vector<1x32xf32>
    %261 = vector.broadcast %260 : vector<1x32xf32> to vector<16x32xf32>
    %262 = arith.addf %259, %261 : vector<16x32xf32>
    %c328 = arith.constant 328 : index
    %c0_90 = arith.constant 0 : index
    %263 = vector.load %arg1[%c328, %c0_90] : memref<920x128xf32, #tpu.memory_space<vmem>>, vector<1x32xf32>
    %c336 = arith.constant 336 : index
    %c0_91 = arith.constant 0 : index
    %264 = vector.load %arg1[%c336, %c0_91] : memref<920x128xf32, #tpu.memory_space<vmem>>, vector<1x32xf32>
    %cst_92 = arith.constant dense<0.000000e+00> : vector<16xf32>
    %265 = vector.multi_reduction <add>, %262, %cst_92 [1] : vector<16x32xf32> to vector<16xf32>
    %266 = vector.shape_cast %265 : vector<16xf32> to vector<16x1xf32>
    %cst_93 = arith.constant 3.200000e+01 : f32
    %267 = vector.broadcast %cst_93 : f32 to vector<16x1xf32>
    %268 = arith.divf %266, %267 : vector<16x1xf32>
    %269 = vector.broadcast %268 : vector<16x1xf32> to vector<16x32xf32>
    %270 = arith.subf %262, %269 : vector<16x32xf32>
    %271 = arith.mulf %270, %270 : vector<16x32xf32>
    %cst_94 = arith.constant dense<0.000000e+00> : vector<16xf32>
    %272 = vector.multi_reduction <add>, %271, %cst_94 [1] : vector<16x32xf32> to vector<16xf32>
    %273 = vector.shape_cast %272 : vector<16xf32> to vector<16x1xf32>
    %cst_95 = arith.constant 3.200000e+01 : f32
    %274 = vector.broadcast %cst_95 : f32 to vector<16x1xf32>
    %275 = arith.divf %273, %274 : vector<16x1xf32>
    %cst_96 = arith.constant 9.99999974E-6 : f32
    %276 = vector.broadcast %cst_96 : f32 to vector<16x1xf32>
    %277 = arith.addf %275, %276 : vector<16x1xf32>
    %278 = math.rsqrt %277 : vector<16x1xf32>
    %279 = vector.broadcast %278 : vector<16x1xf32> to vector<16x32xf32>
    %280 = arith.mulf %270, %279 : vector<16x32xf32>
    %281 = vector.broadcast %263 : vector<1x32xf32> to vector<16x32xf32>
    %282 = arith.mulf %280, %281 : vector<16x32xf32>
    %283 = vector.broadcast %264 : vector<1x32xf32> to vector<16x32xf32>
    %284 = arith.addf %282, %283 : vector<16x32xf32>
    %c0_97 = arith.constant 0 : index
    %c0_98 = arith.constant 0 : index
    %285 = vector.load %arg2[%c0_97, %c0_98] : memref<16x32xf32, #tpu.memory_space<vmem>>, vector<16x32xf32>
    tpu.vector_store %arg2[%c0_97, %c0_98], %284 {strides = array<i32>} : memref<16x32xf32, #tpu.memory_space<vmem>>, vector<16x32xf32>,
    return
  }
}

</mosaic_0001>

<bundles_post_ra>
// kernel: encoder_forward.1
= control target key start
LH: loop header
LB: loop body
LE: loop exit
PB: predicated region body
PF: predicated region fallthrough
CT: control target
= control target key end

     0   :  { %7 = vsyncpa [#allocation3], 0  ;;  %s3341_s0 = inlined_call_operand.vmem [shape: f32[32,24], index: 0, kind: input, shape index: {}]   ;;  %s3342_s1 = inlined_call_operand.hbm [shape: f32[920,128], index: 1, kind: input, shape index: {}]   ;;  %s3343_s2 = inlined_call_operand.hbm [shape: f32[16,32], index: 2, kind: output, shape index: {}]  }
   0x1   :  { %8 = vsyncpa [#allocation4], 0  ;;  %s3022_s9 = smov [#allocation2]  }
   0x2   :  { %s16_s10 = sshll.u32 %s3022_s9, 4  ;;  %s17_s10 = int_to_ptr.vmem [resolvable:$true] %s16_s10 }
   0x3   :  { %s2986_s11 = scalar_lea.vmem %s17_s10, 14720  ;;  %p2991_p1 = scmp.lt.s32.totalorder %s17_s10, %s17_s10 }
   0x4   :  { %p2987_p0 = scmp.ne.s32.totalorder %s17_s10, %s2986_s11  ;;  %p2992_p2 = scmp.lt.s32.totalorder %s2986_s11, %s2986_s11 }
   0x6   :  { %p2993_p3 = por %p2992_p2, %p2991_p1 }
   0x8   :  { %p2994_p4 = pnand %p2993_p3, %p2987_p0 }
   0xa   :  { %2997 = shalt.err (!%p2994_p4)
}
   0xb   :  { %s3023_s12 = smov 128   ;;  %s3024_s13 = smov 8  }
   0xc   :  { %22 = dma.hbm_to_vmem [thread:$0]  %s3342_s1, 14720, %s17_s10, [#allocation3], %s3023_s12, %s3023_s12, %s3024_s13  }
   0xd   :  { %3018 = dma.done.wait [#allocation3], 14720  }
   0xe   :  { %3019 = vsyncadd [#allocation3], 4294952576  ;;  %vm38_vm0 = vcmask 195584   ;;  %v32_v0 = vld [vmem:[#allocation2 + $0x10] sm:$0xff]  ;;  %v31_v1 = vld [vmem:[#allocation2 + $0x8] sm:$0xff]  ;;  %vm178_vm1 = vcmask 261120  }
   0xf   :  { %2598 = vmatprep.subr.mxu0 %v32_v0  ;;  %v26_v2 = vld [vmem:[%s3341_s0] sm:$0xff]  ;;  %v27_v4 = vld [vmem:[%s3341_s0 + $0x8] sm:$0xff]  ;;  %v28_v5 = vld [vmem:[%s3341_s0 + $0x10] sm:$0xff]  ;;  %vm872_vm2 = vcmask 130048   ;;  %s3026_s23 = smov 64   ;;  %s3027_s24 = smov [#allocation5]  }
  0x10   :  { %2599 = vmatpush3.msra.mxu0 %v32_v0  ;;  %v30_v3 = vld [vmem:[#allocation2] sm:$0xff]  ;;  %2604 = vmatprep.mubr.msk.f32.mxu0 %vm38_vm0, %v26_v2  ;;  %v29_v6 = vld [vmem:[%s3341_s0 + $0x18] sm:$0xff]  ;;  %v299_v8 = vld [vmem:[#allocation2 + $0x88] sm:$0xff]  ;;  %s3025_s0 = smov 96   ;;  %s2355_s25 = sshll.u32 %s3027_s24, 4  ;;  %s2356_s25 = int_to_ptr.vmem [resolvable:$true] %s2355_s25 }
  0x11   :  { %2600 = vmatprep.subr.mxu0 %v31_v1  ;;  %v172_v7 = vld [vmem:[#allocation2 + $0x20] sm:$0xff]  ;;  %v2367_v9 = vld [vmem:[#allocation2 + $0x18] ss:$0 sm:$0xff]  ;;  %v173_v54 = vld [vmem:[#allocation2 + $0x28] sm:$0xff]  ;;  %s2998_s26 = scalar_lea.vmem %s2356_s25, 256  ;;  %p3003_p6 = scmp.lt.s32.totalorder %s2356_s25, %s2356_s25 }
  0x12   :  { %2601 = vmatpush3.msra.mxu0 %v31_v1  ;;  %2618 = vmatprep.mubr.msk.f32.mxu1 %vm178_vm1, %v172_v7  ;;  %v174_v55 = vld [vmem:[#allocation2 + $0x30] sm:$0xff]  ;;  %v175_v56 = vld [vmem:[#allocation2 + $0x38] sm:$0xff]  ;;  %v176_v57 = vld [vmem:[#allocation2 + $0x40] sm:$0xff]  ;;  %p2999_p5 = scmp.ne.s32.totalorder %s2356_s25, %s2998_s26  ;;  %p3004_p7 = scmp.lt.s32.totalorder %s2998_s26, %s2998_s26 }
  0x13   :  { %2602 = vmatprep.subr.mxu0 %v30_v3  ;;  %v177_v58 = vld [vmem:[#allocation2 + $0x48] sm:$0xff]  ;;  %v298_v59 = vld [vmem:[#allocation2 + $0x80] sm:$0xff]  ;;  %v297_v60 = vld [vmem:[#allocation2 + $0x78] sm:$0xff] }
  0x14   :  { %2603 = vmatpush3.msra.mxu0 %v30_v3  ;;  %v296_v61 = vld [vmem:[#allocation2 + $0x70] sm:$0xff]  ;;  %v295_v62 = vld [vmem:[#allocation2 + $0x68] sm:$0xff]  ;;  %v294_v3 = vld [vmem:[#allocation2 + $0x60] sm:$0xff]  ;;  %p3005_p8 = por %p3004_p7, %p3003_p6 }
  0x15   :  { %2605 = vmatmul.mubr.msk.f32.vlgmr.msra.gmra.mxu0 %vm38_vm0, %v27_v4  ;;  %2627 = vmatprep.subr.mxu0 %v299_v8  ;;  %v293_v4 = vld [vmem:[#allocation2 + $0x58] sm:$0xff]  ;;  %v303_v7 = vld [vmem:[#allocation2 + $0xa8] sm:$0xff] }
  0x16   :  { %2607 = vmatprep.mubr.msk.f32.mxu0 %vm38_vm0, %v28_v5  ;;  %2628 = vmatpush3.msra.mxu0 %v299_v8  ;;  %p3006_p9 = pnand %p3005_p8, %p2999_p5 }
  0x17   :  { %2629 = vmatprep.subr.mxu0 %v298_v59 }
  0x18   :  { %2630 = vmatpush3.msra.mxu0 %v298_v59  ;;  %v638_v59 = vld [vmem:[#allocation2 + $0x180] sm:$0xff] }
  0x19   :  { %2608 = vmatmul.mubr.msk.f32.gmra.mxu0 %vm38_vm0, %v29_v6  ;;  %2631 = vmatprep.subr.mxu0 %v297_v60  ;;  %v292_v6 = vld [vmem:[#allocation2 + $0x50] sm:$0xff] }
  0x1a   :  { %2632 = vmatpush3.msra.mxu0 %v297_v60  ;;  %v637_v60 = vld [vmem:[#allocation2 + $0x178] sm:$0xff] }
  0x1b   :  { %2633 = vmatprep.subr.mxu0 %v296_v61 }
  0x1c   :  { %2634 = vmatpush3.msra.mxu0 %v296_v61  ;;  %v636_v61 = vld [vmem:[#allocation2 + $0x170] sm:$0xff] }
  0x1d   :  { %2638 = vmatprep.subr.mxu0 %v295_v62 }
  0xd5   :  { %v2606_v10 = vpop.f32.mrf.mxu0 }
  0xd6   :  { %v123_v11 = vadd.f32 %v2606_v10, %v2367_v9  ;;  %v301_v10 = vld [vmem:[#allocation2 + $0x98] sm:$0xff] }
  0xd7   :  { %v117_v12 = vpop.f32.mrf.mxu0 }
  0xd8   :  { %v137_v13 = vmul.f32 %v123_v11, %v123_v11  ;;  %v118_v14 = vadd.f32 %v2367_v9, %v117_v12 }
  0xd9   :  { %v2609_v15 = vpop.f32.mrf.mxu0 }
  0xda   :  { %v141_v16 = vmul.f32 %v137_v13, %v123_v11  ;;  %v136_v17 = vmul.f32 %v118_v14, %v118_v14  ;;  %v133_v18 = vadd.f32 %v2609_v15, %v2367_v9 }
  0xdb   :  { %v127_v19 = vpop.f32.mrf.mxu0 }
  0xdc   :  { %v145_v20 = vmul.f32 0.044715, %v141_v16  ;;  %v140_v21 = vmul.f32 %v136_v17, %v118_v14  ;;  %v139_v22 = vmul.f32 %v133_v18, %v133_v18  ;;  %v128_v23 = vadd.f32 %v2367_v9, %v127_v19  ;;  %v302_v9 = vld [vmem:[#allocation2 + $0xa0] sm:$0xff] }
  0xde   :  { %v149_v24 = vadd.f32 %v145_v20, %v123_v11  ;;  %v144_v25 = vmul.f32 0.044715, %v140_v21  ;;  %v143_v26 = vmul.f32 %v139_v22, %v133_v18  ;;  %v138_v27 = vmul.f32 %v128_v23, %v128_v23 }
  0xe0   :  { %v153_v28 = vmul.f32 0.7978846, %v149_v24  ;;  %v148_v29 = vadd.f32 %v144_v25, %v118_v14  ;;  %v147_v30 = vmul.f32 0.044715, %v143_v26  ;;  %v142_v31 = vmul.f32 %v138_v27, %v128_v23 }
  0xe2   :  { %v152_v32 = vmul.f32 0.7978846, %v148_v29  ;;  %v146_v33 = vmul.f32 0.044715, %v142_v31  ;;  %v151_v34 = vadd.f32 %v147_v30, %v133_v18  ;;  %2866 = vtanh.f32 %v153_v28 }
  0xe4   :  { %v150_v35 = vadd.f32 %v146_v33, %v128_v23  ;;  %v155_v36 = vmul.f32 0.7978846, %v151_v34  ;;  %2868 = vtanh.f32 %v152_v32 }
  0xe6   :  { %v154_v37 = vmul.f32 0.7978846, %v150_v35  ;;  %2870 = vtanh.f32 %v155_v36 }
  0xe8   :  { %2872 = vtanh.f32 %v154_v37 }
  0xef   :  { %v2867_v38 = vpop.eup %2866 }
  0xf0   :  { %v161_v42 = vadd.f32 1.0, %v2867_v38 }
  0xf1   :  { %v2869_v39 = vpop.eup %2868 }
  0xf2   :  { %v160_v46 = vadd.f32 1.0, %v2869_v39  ;;  %v165_v49 = vmul.f32 0.5, %v161_v42 }
  0xf3   :  { %v2871_v40 = vpop.eup %2870 }
  0xf4   :  { %v163_v41 = vadd.f32 1.0, %v2871_v40  ;;  %v164_v51 = vmul.f32 0.5, %v160_v46  ;;  %v169_v52 = vmul.f32 %v165_v49, %v123_v11  ;;  %v300_v11 = vld [vmem:[#allocation2 + $0x90] sm:$0xff] }
  0xf5   :  { %v2873_v43 = vpop.eup %2872 }
  0xf6   :  { %v167_v44 = vmul.f32 0.5, %v163_v41  ;;  %v162_v45 = vadd.f32 1.0, %v2873_v43  ;;  %v168_v53 = vmul.f32 %v164_v51, %v118_v14  ;;  %v574_v41 = vld [vmem:[#allocation2 + $0xb8] sm:$0xff] }
  0xf8   :  { %v171_v47 = vmul.f32 %v167_v44, %v133_v18  ;;  %v166_v48 = vmul.f32 0.5, %v162_v45  ;;  %v2384_v18 = vld [vmem:[#allocation2 + $0xb0] ss:$0 sm:$0xff]  ;;  %v575_v44 = vld [vmem:[#allocation2 + $0xc0] sm:$0xff] }
  0xfa   :  { %2610 = vmatprep.subr.mxu1 %v171_v47  ;;  %v170_v50 = vmul.f32 %v166_v48, %v128_v23 }
  0xfb   :  { %2611 = vmatpush3.msra.mxu1 %v171_v47 }
  0xfc   :  { %2612 = vmatprep.subr.mxu1 %v170_v50 }
  0xfd   :  { %2613 = vmatpush3.msra.mxu1 %v170_v50 }
  0xfe   :  { %2614 = vmatprep.subr.mxu1 %v169_v52 }
  0xff   :  { %2615 = vmatpush3.msra.mxu1 %v169_v52 }
 0x100   :  { %2616 = vmatprep.subr.mxu1 %v168_v53 }
 0x101   :  { %2617 = vmatpush3.msra.mxu1 %v168_v53 }
 0x102   :  { %2619 = vmatmul.mubr.msk.f32.vlgmr.msra.gmra.mxu1 %vm178_vm1, %v173_v54  ;;  %2660 = vmatprep.subr.mxu1 %v638_v59 }
 0x103   :  { %2621 = vmatprep.mubr.msk.f32.mxu1 %vm178_vm1, %v174_v55  ;;  %2661 = vmatpush3.msra.mxu1 %v638_v59 }
 0x104   :  { %2662 = vmatprep.subr.mxu1 %v637_v60 }
 0x105   :  { %2663 = vmatpush3.msra.mxu1 %v637_v60 }
 0x106   :  { %2622 = vmatmul.mubr.msk.f32.gmra.mxu1 %vm178_vm1, %v175_v56  ;;  %2664 = vmatprep.subr.mxu1 %v636_v61 }
 0x107   :  { %2624 = vmatprep.mubr.msk.f32.mxu1 %vm178_vm1, %v176_v57  ;;  %2665 = vmatpush3.msra.mxu1 %v636_v61  ;;  %v3164_v61 = vld [vmem:[#allocation2 + $0x140] sm:$0xff] }
 0x10a   :  { %2625 = vmatmul.mubr.msk.f32.gmra.mxu1 %vm178_vm1, %v177_v58 }
 0x1c2   :  { %v2620_v63 = vpop.f32.mrf.mxu1 }
 0x1c4   :  { %v263_v0 = vpop.f32.mrf.mxu1 }
 0x1c6   :  { %v2623_v1 = vpop.f32.mrf.mxu1 }
 0x1c8   :  { %v273_v2 = vpop.f32.mrf.mxu1 }
 0x1c9   :  { %2635 = vmatprep.mubr.msk.f32.mxu0 %vm178_vm1, %v273_v2 }
 0x1ca   :  { %2636 = vmatmul.mubr.msk.f32.vlgmr.msra.gmra.mxu0 %vm178_vm1, %v2623_v1  ;;  %v2626_v5 = vpop.f32.mrf.mxu1 }
 0x1cb   :  { %2639 = vmatpush3.msra.mxu0 %v295_v62  ;;  %2646 = vmatprep.mubr.msk.f32.mxu0 %vm178_vm1, %v263_v0  ;;  %v635_v62 = vld [vmem:[#allocation2 + $0x168] sm:$0xff] }
 0x1cc   :  { %2640 = vmatprep.subr.mxu0 %v294_v3  ;;  %v283_v8 = vpop.f32.mrf.mxu1  ;;  %2666 = vmatprep.subr.mxu1 %v635_v62 }
 0x1cd   :  { %2641 = vmatpush3.msra.mxu0 %v294_v3  ;;  %2667 = vmatpush3.msra.mxu1 %v635_v62 }
 0x1ce   :  { %2642 = vmatprep.subr.mxu0 %v293_v4 }
 0x1cf   :  { %2643 = vmatpush3.msra.mxu0 %v293_v4 }
 0x1d0   :  { %2644 = vmatprep.subr.mxu0 %v292_v6 }
 0x1d1   :  { %2645 = vmatpush3.msra.mxu0 %v292_v6  ;;  %v2385_v6 = vld [vmem:[#allocation2 + $0x158] ss:$0 sm:$0xff] }
 0x1d2   :  { %2647 = vmatmul.mubr.msk.f32.vlgmr.msra.gmra.mxu0 %vm178_vm1, %v2620_v63  ;;  %2649 = vmatprep.subr.mxu0 %v303_v7 }
 0x1d3   :  { %2650 = vmatpush3.msra.mxu0 %v303_v7  ;;  %2657 = vmatprep.mubr.msk.f32.mxu0 %vm178_vm1, %v283_v8  ;;  %v2386_v8 = vld [vmem:[#allocation2 + $0x160] ss:$0 sm:$0xff] }
 0x1d4   :  { %2651 = vmatprep.subr.mxu0 %v302_v9 }
 0x1d5   :  { %2652 = vmatpush3.msra.mxu0 %v302_v9 }
 0x1d6   :  { %2653 = vmatprep.subr.mxu0 %v301_v10 }
 0x1d7   :  { %2654 = vmatpush3.msra.mxu0 %v301_v10 }
 0x1d8   :  { %2655 = vmatprep.subr.mxu0 %v300_v11 }
 0x1d9   :  { %2656 = vmatpush3.msra.mxu0 %v300_v11 }
 0x1da   :  { %2658 = vmatmul.mubr.msk.f32.vlgmr.msra.gmra.mxu0 %vm178_vm1, %v2626_v5 }
 0x28a   :  { %v2637_v12 = vpop.f32.mrf.mxu0 }
 0x28c   :  { %v376_v13 = vpop.f32.mrf.mxu0 }
 0x292   :  { %v2648_v14 = vpop.f32.mrf.mxu0 }
 0x293   :  { %v463_v16 = vadd.f32 %v2648_v14, %v2637_v12 }
 0x294   :  { %v457_v15 = vpop.f32.mrf.mxu0 }
 0x295   :  { %v458_v19 = vadd.f32 %v457_v15, %v376_v13  ;;  %v2387_v15 = vld [vmem:[#allocation2 + $0x188] ss:$0 sm:$0xff] }
 0x29a   :  { %v2659_v17 = vpop.f32.mrf.mxu0 }
 0x29b   :  { %v548_v20 = vadd.f32 %v2659_v17, %v463_v16 }
 0x29c   :  { %v538_v21 = vpop.f32.mrf.mxu0 }
 0x29d   :  { %v555_v22 = vadd.f32 %v2384_v18, %v548_v20  ;;  %v547_v23 = vadd.f32 %v538_v21, %v458_v19  ;;  %v3093_v19 = vld [vmem:[#allocation2 + $0xc8] sm:$0xff] }
 0x29f   :  { %v557_v24 = vmul.f32 %v555_v22, %v555_v22  ;;  %v554_v25 = vadd.f32 %v2384_v18, %v547_v23 }
 0x2a1   :  { %v559_v26 = vmul.f32 %v557_v24, %v555_v22  ;;  %v556_v27 = vmul.f32 %v554_v25, %v554_v25  ;;  %v3107_v24 = vld [vmem:[#allocation2 + $0xd0] sm:$0xff] }
 0x2a3   :  { %v561_v28 = vmul.f32 0.044715, %v559_v26  ;;  %v558_v29 = vmul.f32 %v556_v27, %v554_v25 }
 0x2a5   :  { %v563_v30 = vadd.f32 %v561_v28, %v555_v22  ;;  %v560_v31 = vmul.f32 0.044715, %v558_v29  ;;  %v3116_v28 = vld [vmem:[#allocation2 + $0xe0] sm:$0xff]  ;;  %v3119_v29 = vld [vmem:[#allocation2 + $0xe8] sm:$0xff] }
 0x2a7   :  { %v565_v32 = vmul.f32 0.7978846, %v563_v30  ;;  %v562_v33 = vadd.f32 %v560_v31, %v554_v25 }
 0x2a9   :  { %2874 = vtanh.f32 %v565_v32  ;;  %v564_v34 = vmul.f32 0.7978846, %v562_v33  ;;  %v3126_v32 = vld [vmem:[#allocation2 + $0xf0] sm:$0xff]  ;;  %v3129_v33 = vld [vmem:[#allocation2 + $0xf8] sm:$0xff] }
 0x2ab   :  { %2876 = vtanh.f32 %v564_v34 }
 0x2b6   :  { %v2875_v35 = vpop.eup %2874 }
 0x2b7   :  { %v569_v36 = vadd.f32 1.0, %v2875_v35 }
 0x2b8   :  { %v2877_v37 = vpop.eup %2876 }
 0x2b9   :  { %v568_v38 = vadd.f32 1.0, %v2877_v37  ;;  %v571_v39 = vmul.f32 0.5, %v569_v36  ;;  %v3136_v36 = vld [vmem:[#allocation2 + $0x100] sm:$0xff] }
 0x2bb   :  { %v570_v40 = vmul.f32 0.5, %v568_v38  ;;  %v573_v43 = vmul.f32 %v571_v39, %v555_v22  ;;  %v3143_v38 = vld [vmem:[#allocation2 + $0x110] sm:$0xff] }
 0x2bd   :  { %v572_v42 = vmul.f32 %v570_v40, %v554_v25  ;;  %v3081_v47 = vadd.f32 %v575_v44, %v573_v43  ;;  %v3109_v25 = vld [vmem:[#allocation2 + $0xd8] sm:$0xff]  ;;  %v3145_v40 = vld [vmem:[#allocation2 + $0x108] sm:$0xff]  ;;  %v3148_v43 = vld [vmem:[#allocation2 + $0x120] sm:$0xff] }
 0x2bf   :  { %v3077_v45 = vadd.f32 %v574_v41, %v572_v42  ;;  %v599_v48 = vsel %vm178_vm1, %v3081_v47, 0.0 }
 0x2c1   :  { %v596_v46 = vsel %vm178_vm1, %v3077_v45, 0.0 }
 0x2c2   :  { %597 = vadd.xlane.f32.xlu0 %v596_v46 }
 0x2c6   :  { %600 = vadd.xlane.f32.xlu0 %v599_v48 }
 0x34b   :  { %v598_v49 = vpop.xlane.xlu0 %597 }
 0x34c   :  { %v603_v50 = vmul.f32 0.03125, %v598_v49  ;;  %v3152_v49 = vld [vmem:[#allocation2 + $0x118] sm:$0xff] }
 0x34e   :  { %v605_v51 = vsub.f32 %v3077_v45, %v603_v50 }
 0x34f   :  { %v601_v52 = vpop.xlane.xlu0 %600 }
 0x350   :  { %v604_v53 = vmul.f32 0.03125, %v601_v52  ;;  %v607_v54 = vmul.f32 %v605_v51, %v605_v51 }
 0x352   :  { %v606_v55 = vsub.f32 %v3081_v47, %v604_v53  ;;  %v609_v56 = vsel %vm178_vm1, %v607_v54, 0.0  ;;  %v3156_v53 = vld [vmem:[#allocation2 + $0x130] sm:$0xff] }
 0x353   :  { %610 = vadd.xlane.f32.xlu1 %v609_v56  ;;  %v3159_v56 = vld [vmem:[#allocation2 + $0x128] sm:$0xff] }
 0x354   :  { %v608_v57 = vmul.f32 %v606_v55, %v606_v55 }
 0x356   :  { %v612_v58 = vsel %vm178_vm1, %v608_v57, 0.0 }
 0x357   :  { %613 = vadd.xlane.f32.xlu1 %v612_v58 }
 0x3dc   :  { %v611_v63 = vpop.xlane.xlu1 %610 }
 0x3dd   :  { %v615_v0 = vmul.f32 0.03125, %v611_v63 }
 0x3df   :  { %v617_v1 = vadd.f32 1e-05, %v615_v0  ;;  %v3167_v0 = vld [vmem:[#allocation2 + $0x138] sm:$0xff] }
 0x3e0   :  { %v614_v2 = vpop.xlane.xlu1 %613 }
 0x3e1   :  { %2878 = vrsqrt.f32 %v617_v1  ;;  %v616_v3 = vmul.f32 0.03125, %v614_v2 }
 0x3e3   :  { %v618_v4 = vadd.f32 1e-05, %v616_v3 }
 0x3e5   :  { %2880 = vrsqrt.f32 %v618_v4 }
 0x3ee   :  { %v2879_v5 = vpop.eup %2878 }
 0x3ef   :  { %v621_v7 = vmul.f32 %v2879_v5, %v605_v51 }
 0x3f1   :  { %v627_v9 = vmul.f32 %v2385_v6, %v621_v7 }
 0x3f2   :  { %v2881_v10 = vpop.eup %2880 }
 0x3f3   :  { %v622_v11 = vmul.f32 %v2881_v10, %v606_v55  ;;  %v633_v12 = vadd.f32 %v2386_v8, %v627_v9 }
 0x3f5   :  { %v628_v13 = vmul.f32 %v2385_v6, %v622_v11  ;;  %2668 = vmatprep.mubr.msk.f32.mxu1 %vm178_vm1, %v633_v12 }
 0x3f7   :  { %v634_v14 = vadd.f32 %v2386_v8, %v628_v13 }
 0x3f9   :  { %2669 = vmatmul.mubr.msk.f32.vlgmr.msra.gmra.mxu1 %vm178_vm1, %v634_v14 }
 0x4b9   :  { %v2670_v16 = vpop.f32.mrf.mxu1 }
 0x4ba   :  { %v3091_v17 = vadd.f32 %v2670_v16, %v2387_v15 }
 0x4bb   :  { %v716_v18 = vpop.f32.mrf.mxu1 }
 0x4bc   :  { %v3095_v20 = vadd.f32 %v2387_v15, %v716_v18  ;;  %737 = vrot.lane.b32.xlu0 %v3091_v17, %s3025_s0  ;;  %v726_v26 = vmul.f32 %v3091_v17, %v3107_v24  ;;  %v728_v30 = vmul.f32 %v3091_v17, %v3116_v28  ;;  %v730_v34 = vmul.f32 %v3091_v17, %v3126_v32 }
 0x4bd   :  { %v732_v37 = vmul.f32 %v3091_v17, %v3136_v36 }
 0x4be   :  { %735 = vrot.lane.b32.xlu1 %v3095_v20, %s3025_s0  ;;  %v725_v21 = vmul.f32 %v3095_v20, %v3093_v19  ;;  %v727_v27 = vmul.f32 %v3095_v20, %v3109_v25  ;;  %v729_v31 = vmul.f32 %v3095_v20, %v3119_v29  ;;  %v731_v35 = vmul.f32 %v3095_v20, %v3129_v33 }
 0x4c0   :  { %2675 = vmatprep.mubr.msk.f32.mxu0 %vm178_vm1, %v725_v21 }
 0x52e   :  { %v738_v22 = vpop.permute.xlu0 %737 }
 0x52f   :  { %2671 = vmatprep.subr.msk.mxu0 %vm178_vm1, %v738_v22 }
 0x530   :  { %2672 = vmatpush3.xpose.msk.msra.mxu0 %vm178_vm1, %v738_v22  ;;  %v736_v23 = vpop.permute.xlu1 %735 }
 0x531   :  { %2673 = vmatprep.subr.msk.mxu0 %vm178_vm1, %v736_v23 }
 0x534   :  { %2674 = vmatpush3.xpose.msk.msra.mxu0 %vm178_vm1, %v736_v23 }
 0x537   :  { %2676 = vmatmul.mubr.msk.f32.vlgmr.msra.gmra.mxu0 %vm178_vm1, %v726_v26 }
 0x538   :  { %2678 = vmatprep.mubr.msk.f32.mxu0 %vm178_vm1, %v727_v27 }
 0x53b   :  { %2679 = vmatmul.mubr.msk.f32.gmra.mxu0 %vm178_vm1, %v728_v30 }
 0x53c   :  { %2681 = vmatprep.mubr.msk.f32.mxu0 %vm178_vm1, %v729_v31 }
 0x53f   :  { %2682 = vmatmul.mubr.msk.f32.gmra.mxu0 %vm178_vm1, %v730_v34 }
 0x540   :  { %2684 = vmatprep.mubr.msk.f32.mxu0 %vm178_vm1, %v731_v35 }
 0x543   :  { %2685 = vmatmul.mubr.msk.f32.gmra.mxu0 %vm178_vm1, %v732_v37 }
 0x5f7   :  { %v2677_v39 = vpop.f32.mrf.mxu0 }
 0x5f8   :  { %v839_v41 = vadd.f32 %v2677_v39, %v3143_v38 }
 0x5f9   :  { %v833_v42 = vpop.f32.mrf.mxu0 }
 0x5fa   :  { %v834_v44 = vadd.f32 %v833_v42, %v3145_v40  ;;  %v876_v46 = vsel %vm872_vm2, %v839_v41, -inf }
 0x5fb   :  { %877 = vmax.xlane.f32.xlu0 %v876_v46  ;;  %v2680_v48 = vpop.f32.mrf.mxu0 }
 0x5fc   :  { %v849_v50 = vadd.f32 %v2680_v48, %v3148_v43  ;;  %v873_v51 = vsel %vm872_vm2, %v834_v44, -inf }
 0x5fd   :  { %v843_v52 = vpop.f32.mrf.mxu0  ;;  %874 = vmax.xlane.f32.xlu1 %v873_v51 }
 0x5fe   :  { %v844_v54 = vadd.f32 %v843_v52, %v3152_v49  ;;  %v882_v59 = vsel %vm872_vm2, %v849_v50, -inf }
 0x5ff   :  { %v2683_v55 = vpop.f32.mrf.mxu0 }
 0x600   :  { %v859_v57 = vadd.f32 %v2683_v55, %v3156_v53  ;;  %v879_v58 = vsel %vm872_vm2, %v844_v54, -inf }
 0x601   :  { %v853_v60 = vpop.f32.mrf.mxu0  ;;  %880 = vmax.xlane.f32.xlu0 %v879_v58  ;;  %883 = vmax.xlane.f32.xlu1 %v882_v59 }
 0x602   :  { %v854_v62 = vadd.f32 %v853_v60, %v3159_v56  ;;  %v888_v3 = vsel %vm872_vm2, %v859_v57, -inf }
 0x603   :  { %v2686_v63 = vpop.f32.mrf.mxu0 }
 0x604   :  { %v869_v1 = vadd.f32 %v2686_v63, %v3164_v61  ;;  %v885_v2 = vsel %vm872_vm2, %v854_v62, -inf }
 0x605   :  { %v863_v4 = vpop.f32.mrf.mxu0  ;;  %886 = vmax.xlane.f32.xlu0 %v885_v2  ;;  %889 = vmax.xlane.f32.xlu1 %v888_v3 }
 0x606   :  { %v864_v5 = vadd.f32 %v863_v4, %v3167_v0  ;;  %v894_v7 = vsel %vm872_vm2, %v869_v1, -inf }
 0x608   :  { %v891_v6 = vsel %vm872_vm2, %v864_v5, -inf }
 0x609   :  { %892 = vmax.xlane.f32.xlu0 %v891_v6  ;;  %895 = vmax.xlane.f32.xlu1 %v894_v7 }
 0x684   :  { %v878_v8 = vpop.xlane.xlu0 %877 }
 0x685   :  { %v898_v9 = vsub.f32 %v839_v41, %v878_v8 }
 0x686   :  { %v875_v10 = vpop.xlane.xlu1 %874 }
 0x687   :  { %v907_v11 = vmul.f32 1.442695, %v898_v9  ;;  %v897_v12 = vsub.f32 %v834_v44, %v875_v10 }
 0x689   :  { %2882 = vpow2.f32 %v907_v11  ;;  %v905_v13 = vmul.f32 1.442695, %v897_v12 }
 0x68a   :  { %v881_v14 = vpop.xlane.xlu0 %880  ;;  %v884_v15 = vpop.xlane.xlu1 %883 }
 0x68b   :  { %2884 = vpow2.f32 %v905_v13  ;;  %v899_v16 = vsub.f32 %v844_v54, %v881_v14  ;;  %v900_v18 = vsub.f32 %v849_v50, %v884_v15 }
 0x68d   :  { %v909_v21 = vmul.f32 1.442695, %v899_v16  ;;  %v911_v22 = vmul.f32 1.442695, %v900_v18 }
 0x68e   :  { %v887_v23 = vpop.xlane.xlu0 %886  ;;  %v890_v26 = vpop.xlane.xlu1 %889 }
 0x68f   :  { %2886 = vpow2.f32 %v909_v21  ;;  %v901_v27 = vsub.f32 %v854_v62, %v887_v23  ;;  %v902_v30 = vsub.f32 %v859_v57, %v890_v26 }
 0x690   :  { %2888 = vpow2.f32 %v911_v22 }
 0x691   :  { %v913_v31 = vmul.f32 1.442695, %v901_v27  ;;  %v915_v34 = vmul.f32 1.442695, %v902_v30 }
 0x692   :  { %v893_v35 = vpop.xlane.xlu0 %892  ;;  %v896_v37 = vpop.xlane.xlu1 %895 }
 0x693   :  { %2890 = vpow2.f32 %v913_v31  ;;  %v903_v39 = vsub.f32 %v864_v5, %v893_v35  ;;  %v904_v41 = vsub.f32 %v869_v1, %v896_v37 }
 0x694   :  { %2892 = vpow2.f32 %v915_v34 }
 0x695   :  { %v917_v42 = vmul.f32 1.442695, %v903_v39  ;;  %v919_v44 = vmul.f32 1.442695, %v904_v41  ;;  %v1113_v39 = vld [vmem:[#allocation2 + $0x1a8] sm:$0xff]  ;;  %v1112_v41 = vld [vmem:[#allocation2 + $0x1a0] sm:$0xff] }
 0x696   :  { %v2883_v46 = vpop.eup %2882  ;;  %2703 = vmatprep.subr.mxu0 %v1113_v39 }
 0x697   :  { %2894 = vpow2.f32 %v917_v42  ;;  %v924_v48 = vsel %vm872_vm2, %v2883_v46, 0.0  ;;  %2704 = vmatpush3.msra.mxu0 %v1113_v39  ;;  %v1111_v42 = vld [vmem:[#allocation2 + $0x198] sm:$0xff]  ;;  %v1244_v39 = vld [vmem:[#allocation2 + $0x1c8] sm:$0xff] }
 0x698   :  { %v2885_v50 = vpop.eup %2884  ;;  %2896 = vpow2.f32 %v919_v44  ;;  %925 = vadd.xlane.f32.xlu1 %v924_v48  ;;  %2705 = vmatprep.subr.mxu0 %v1112_v41  ;;  %v1110_v44 = vld [vmem:[#allocation2 + $0x190] sm:$0xff] }
 0x699   :  { %v921_v51 = vsel %vm872_vm2, %v2885_v50, 0.0  ;;  %2706 = vmatpush3.msra.mxu0 %v1112_v41 }
 0x69a   :  { %922 = vadd.xlane.f32.xlu0 %v921_v51  ;;  %2707 = vmatprep.subr.mxu0 %v1111_v42 }
 0x69b   :  { %2708 = vmatpush3.msra.mxu0 %v1111_v42 }
 0x69c   :  { %v2887_v52 = vpop.eup %2886  ;;  %2709 = vmatprep.subr.mxu0 %v1110_v44 }
 0x69d   :  { %v2889_v54 = vpop.eup %2888  ;;  %v927_v55 = vsel %vm872_vm2, %v2887_v52, 0.0  ;;  %2710 = vmatpush3.msra.mxu0 %v1110_v44 }
 0x69e   :  { %928 = vadd.xlane.f32.xlu0 %v927_v55  ;;  %v930_v57 = vsel %vm872_vm2, %v2889_v54, 0.0 }
 0x69f   :  { %931 = vadd.xlane.f32.xlu1 %v930_v57 }
 0x6a0   :  { %v2891_v58 = vpop.eup %2890 }
 0x6a1   :  { %v2893_v59 = vpop.eup %2892  ;;  %v933_v60 = vsel %vm872_vm2, %v2891_v58, 0.0 }
 0x6a2   :  { %934 = vadd.xlane.f32.xlu0 %v933_v60  ;;  %v936_v62 = vsel %vm872_vm2, %v2893_v59, 0.0 }
 0x6a3   :  { %937 = vadd.xlane.f32.xlu1 %v936_v62 }
 0x6a4   :  { %v2895_v63 = vpop.eup %2894 }
 0x6a5   :  { %v2897_v1 = vpop.eup %2896  ;;  %v939_v2 = vsel %vm872_vm2, %v2895_v63, 0.0 }
 0x6a6   :  { %940 = vadd.xlane.f32.xlu0 %v939_v2  ;;  %v942_v3 = vsel %vm872_vm2, %v2897_v1, 0.0 }
 0x6a7   :  { %943 = vadd.xlane.f32.xlu1 %v942_v3 }
 0x6b8   :  { %961 = vrot.lane.b32.xlu1 %v3095_v20, %s3026_s23 }
 0x6bc   :  { %963 = vrot.lane.b32.xlu0 %v3091_v17, %s3026_s23 }
 0x721   :  { %v926_v4 = vpop.xlane.xlu1 %925 }
 0x723   :  { %v923_v5 = vpop.xlane.xlu0 %922 }
 0x724   :  { %2898 = vrcp.f32 %v923_v5 }
 0x725   :  { %2900 = vrcp.f32 %v926_v4 }
 0x727   :  { %v929_v6 = vpop.xlane.xlu0 %928 }
 0x728   :  { %2902 = vrcp.f32 %v929_v6  ;;  %v932_v7 = vpop.xlane.xlu1 %931 }
 0x729   :  { %2904 = vrcp.f32 %v932_v7 }
 0x72b   :  { %v935_v8 = vpop.xlane.xlu0 %934 }
 0x72c   :  { %2906 = vrcp.f32 %v935_v8  ;;  %v938_v9 = vpop.xlane.xlu1 %937 }
 0x72d   :  { %2908 = vrcp.f32 %v938_v9 }
 0x72f   :  { %v941_v10 = vpop.xlane.xlu0 %940 }
 0x730   :  { %2910 = vrcp.f32 %v941_v10  ;;  %v944_v11 = vpop.xlane.xlu1 %943 }
 0x731   :  { %v2899_v12 = vpop.eup %2898  ;;  %2912 = vrcp.f32 %v944_v11  ;;  %v2410_v11 = vld [vmem:[#allocation2 + $0x1b0] ss:$0 sm:$0xff] }
 0x732   :  { %v953_v20 = vmul.f32 %v2899_v12, %v2885_v50  ;;  %v2901_v13 = vpop.eup %2900 }
 0x733   :  { %v964_v17 = vpop.permute.xlu0 %963  ;;  %v954_v16 = vmul.f32 %v2901_v13, %v2883_v46 }
 0x734   :  { %2687 = vmatprep.subr.mxu1 %v964_v17  ;;  %2691 = vmatprep.mubr.msk.f32.mxu1 %vm872_vm2, %v953_v20  ;;  %v962_v15 = vpop.permute.xlu1 %961 }
 0x735   :  { %v2903_v14 = vpop.eup %2902  ;;  %2688 = vmatpush3.msra.mxu1 %v964_v17 }
 0x736   :  { %2689 = vmatprep.subr.mxu1 %v962_v15  ;;  %v955_v18 = vmul.f32 %v2903_v14, %v2887_v52  ;;  %v2905_v21 = vpop.eup %2904 }
 0x737   :  { %2690 = vmatpush3.msra.mxu1 %v962_v15  ;;  %v956_v23 = vmul.f32 %v2905_v21, %v2889_v54 }
 0x738   :  { %2692 = vmatmul.mubr.msk.f32.vlgmr.msra.gmra.mxu1 %vm872_vm2, %v954_v16 }
 0x739   :  { %v2907_v22 = vpop.eup %2906  ;;  %2694 = vmatprep.mubr.msk.f32.mxu1 %vm872_vm2, %v955_v18 }
 0x73a   :  { %v957_v26 = vmul.f32 %v2907_v22, %v2891_v58  ;;  %v2909_v27 = vpop.eup %2908 }
 0x73b   :  { %v958_v31 = vmul.f32 %v2909_v27, %v2893_v59 }
 0x73c   :  { %2695 = vmatmul.mubr.msk.f32.gmra.mxu1 %vm872_vm2, %v956_v23 }
 0x73d   :  { %v2911_v30 = vpop.eup %2910  ;;  %2697 = vmatprep.mubr.msk.f32.mxu1 %vm872_vm2, %v957_v26 }
 0x73e   :  { %v959_v34 = vmul.f32 %v2911_v30, %v2895_v63  ;;  %v2913_v35 = vpop.eup %2912 }
 0x73f   :  { %v960_v37 = vmul.f32 %v2913_v35, %v2897_v1  ;;  %v1246_v35 = vld [vmem:[#allocation2 + $0x1d8] sm:$0xff] }
 0x740   :  { %2698 = vmatmul.mubr.msk.f32.gmra.mxu1 %vm872_vm2, %v958_v31 }
 0x741   :  { %2700 = vmatprep.mubr.msk.f32.mxu1 %vm872_vm2, %v959_v34  ;;  %v1247_v34 = vld [vmem:[#allocation2 + $0x1e0] sm:$0xff] }
 0x742   :  { %2714 = vmatprep.subr.mxu1 %v1247_v34 }
 0x743   :  { %2715 = vmatpush3.msra.mxu1 %v1247_v34 }
 0x744   :  { %2701 = vmatmul.mubr.msk.f32.gmra.mxu1 %vm872_vm2, %v960_v37  ;;  %v1245_v37 = vld [vmem:[#allocation2 + $0x1d0] sm:$0xff]  ;;  %2716 = vmatprep.subr.mxu1 %v1246_v35 }
 0x745   :  { %2717 = vmatpush3.msra.mxu1 %v1246_v35 }
 0x746   :  { %2718 = vmatprep.subr.mxu1 %v1245_v37 }
 0x747   :  { %2719 = vmatpush3.msra.mxu1 %v1245_v37 }
 0x748   :  { %2720 = vmatprep.subr.mxu1 %v1244_v39 }
 0x749   :  { %2721 = vmatpush3.msra.mxu1 %v1244_v39 }
 0x7f8   :  { %v2693_v46 = vpop.f32.mrf.mxu1 }
 0x7f9   :  { %v1097_v60 = vmul.f32 %v2693_v46, %v3107_v24 }
 0x7fa   :  { %v1057_v48 = vpop.f32.mrf.mxu1 }
 0x7fb   :  { %v1096_v58 = vmul.f32 %v1057_v48, %v3093_v19 }
 0x7fc   :  { %v2696_v50 = vpop.f32.mrf.mxu1 }
 0x7fd   :  { %v1099_v55 = vmul.f32 %v2696_v50, %v3116_v28 }
 0x7fe   :  { %v1067_v51 = vpop.f32.mrf.mxu1 }
 0x7ff   :  { %v1098_v54 = vmul.f32 %v1067_v51, %v3109_v25  ;;  %v1105_v2 = vadd.f32 %v1099_v55, %v1097_v60 }
 0x800   :  { %v2699_v52 = vpop.f32.mrf.mxu1 }
 0x801   :  { %v1101_v62 = vmul.f32 %v2699_v52, %v3126_v32  ;;  %v1104_v1 = vadd.f32 %v1098_v54, %v1096_v58  ;;  %v2411_v52 = vld [vmem:[#allocation2 + $0x1b8] ss:$0 sm:$0xff] }
 0x802   :  { %v1077_v57 = vpop.f32.mrf.mxu1 }
 0x803   :  { %v1100_v59 = vmul.f32 %v1077_v57, %v3119_v29  ;;  %v1107_v7 = vadd.f32 %v1105_v2, %v1101_v62  ;;  %v1366_v2 = vld [vmem:[#allocation2 + $0x260] sm:$0xff] }
 0x804   :  { %v2702_v63 = vpop.f32.mrf.mxu1 }
 0x805   :  { %v1103_v3 = vmul.f32 %v2702_v63, %v3136_v36  ;;  %v1106_v5 = vadd.f32 %v1104_v1, %v1100_v59  ;;  %v2412_v59 = vld [vmem:[#allocation2 + $0x1c0] ss:$0 sm:$0xff]  ;;  %v1367_v1 = vld [vmem:[#allocation2 + $0x268] sm:$0xff] }
 0x806   :  { %v1087_v4 = vpop.f32.mrf.mxu1  ;;  %2725 = vmatprep.subr.mxu0 %v1367_v1 }
 0x807   :  { %v1102_v6 = vmul.f32 %v1087_v4, %v3129_v33  ;;  %v1109_v9 = vadd.f32 %v1107_v7, %v1103_v3  ;;  %v1365_v3 = vld [vmem:[#allocation2 + $0x258] sm:$0xff]  ;;  %v1364_v4 = vld [vmem:[#allocation2 + $0x250] sm:$0xff] }
 0x808   :  { %v1361_v7 = vld [vmem:[#allocation2 + $0x238] sm:$0xff] }
 0x809   :  { %v1108_v8 = vadd.f32 %v1106_v5, %v1102_v6  ;;  %v1363_v5 = vld [vmem:[#allocation2 + $0x248] sm:$0xff]  ;;  %v1362_v6 = vld [vmem:[#allocation2 + $0x240] sm:$0xff] }
 0x80b   :  { %2711 = vmatprep.mubr.msk.f32.mxu0 %vm178_vm1, %v1108_v8  ;;  %v1360_v8 = vld [vmem:[#allocation2 + $0x230] sm:$0xff] }
 0x80c   :  { %2712 = vmatmul.mubr.msk.f32.vlgmr.msra.gmra.mxu0 %vm178_vm1, %v1109_v9  ;;  %v1359_v9 = vld [vmem:[#allocation2 + $0x228] sm:$0xff] }
 0x80d   :  { %2726 = vmatpush3.msra.mxu0 %v1367_v1 }
 0x80e   :  { %2727 = vmatprep.subr.mxu0 %v1366_v2 }
 0x80f   :  { %2728 = vmatpush3.msra.mxu0 %v1366_v2 }
 0x810   :  { %2729 = vmatprep.subr.mxu0 %v1365_v3 }
 0x811   :  { %2730 = vmatpush3.msra.mxu0 %v1365_v3 }
 0x812   :  { %2731 = vmatprep.subr.mxu0 %v1364_v4 }
 0x813   :  { %2732 = vmatpush3.msra.mxu0 %v1364_v4 }
 0x814   :  { %2733 = vmatprep.subr.mxu0 %v1363_v5 }
 0x815   :  { %2734 = vmatpush3.msra.mxu0 %v1363_v5 }
 0x816   :  { %2735 = vmatprep.subr.mxu0 %v1362_v6 }
 0x817   :  { %2736 = vmatpush3.msra.mxu0 %v1362_v6 }
 0x818   :  { %2737 = vmatprep.subr.mxu0 %v1361_v7 }
 0x819   :  { %2738 = vmatpush3.msra.mxu0 %v1361_v7 }
 0x81a   :  { %2739 = vmatprep.subr.mxu0 %v1360_v8 }
 0x81b   :  { %2740 = vmatpush3.msra.mxu0 %v1360_v8 }
 0x81c   :  { %2741 = vmatprep.subr.mxu0 %v1359_v9 }
 0x81d   :  { %2742 = vmatpush3.msra.mxu0 %v1359_v9 }
 0x8cc   :  { %v2713_v10 = vpop.f32.mrf.mxu0 }
 0x8cd   :  { %v1196_v12 = vadd.f32 %v2713_v10, %v3081_v47  ;;  %v1358_v10 = vld [vmem:[#allocation2 + $0x220] sm:$0xff] }
 0x8ce   :  { %v1186_v20 = vpop.f32.mrf.mxu0  ;;  %2743 = vmatprep.subr.mxu0 %v1358_v10 }
 0x8cf   :  { %v3206_v13 = vadd.f32 %v2410_v11, %v1196_v12  ;;  %v1195_v17 = vadd.f32 %v1186_v20, %v3077_v45  ;;  %2744 = vmatpush3.msra.mxu0 %v1358_v10  ;;  %v1356_v12 = vld [vmem:[#allocation2 + $0x210] sm:$0xff]  ;;  %v1355_v20 = vld [vmem:[#allocation2 + $0x208] sm:$0xff] }
 0x8d1   :  { %v3209_v14 = vadd.f32 %v2410_v11, %v1195_v17  ;;  %v1209_v15 = vsel %vm178_vm1, %v3206_v13, 0.0  ;;  %v1357_v11 = vld [vmem:[#allocation2 + $0x218] sm:$0xff]  ;;  %v1354_v17 = vld [vmem:[#allocation2 + $0x200] sm:$0xff] }
 0x8d2   :  { %1210 = vadd.xlane.f32.xlu0 %v1209_v15  ;;  %2745 = vmatprep.subr.mxu0 %v1357_v11  ;;  %v1353_v15 = vld [vmem:[#allocation2 + $0x1f8] sm:$0xff] }
 0x8d3   :  { %v1206_v16 = vsel %vm178_vm1, %v3209_v14, 0.0  ;;  %2746 = vmatpush3.msra.mxu0 %v1357_v11  ;;  %v1495_v11 = vld [vmem:[#allocation2 + $0x2a0] sm:$0xff] }
 0x8d4   :  { %1207 = vadd.xlane.f32.xlu1 %v1206_v16  ;;  %2747 = vmatprep.subr.mxu0 %v1356_v12  ;;  %v1352_v16 = vld [vmem:[#allocation2 + $0x1f0] sm:$0xff] }
 0x8d5   :  { %2748 = vmatpush3.msra.mxu0 %v1356_v12  ;;  %v1494_v12 = vld [vmem:[#allocation2 + $0x298] sm:$0xff]  ;;  %2760 = vmatprep.subr.mxu1 %v1495_v11 }
 0x8d6   :  { %2749 = vmatprep.subr.mxu0 %v1355_v20 }
 0x8d7   :  { %2750 = vmatpush3.msra.mxu0 %v1355_v20  ;;  %v1493_v20 = vld [vmem:[#allocation2 + $0x290] sm:$0xff] }
 0x8d8   :  { %2751 = vmatprep.subr.mxu0 %v1354_v17 }
 0x8d9   :  { %2752 = vmatpush3.msra.mxu0 %v1354_v17  ;;  %v1492_v17 = vld [vmem:[#allocation2 + $0x288] sm:$0xff] }
 0x8da   :  { %2753 = vmatprep.subr.mxu0 %v1353_v15 }
 0x8db   :  { %2754 = vmatpush3.msra.mxu0 %v1353_v15 }
 0x8dc   :  { %2755 = vmatprep.subr.mxu0 %v1352_v16 }
 0x8dd   :  { %2756 = vmatpush3.msra.mxu0 %v1352_v16 }
 0x95b   :  { %v1211_v18 = vpop.xlane.xlu0 %1210 }
 0x95c   :  { %v1213_v21 = vmul.f32 0.03125, %v1211_v18  ;;  %v2413_v18 = vld [vmem:[#allocation2 + $0x1e8] ss:$0 sm:$0xff] }
 0x95d   :  { %v1208_v22 = vpop.xlane.xlu1 %1207 }
 0x95e   :  { %v1215_v47 = vsub.f32 %v3206_v13, %v1213_v21  ;;  %v1212_v23 = vmul.f32 0.03125, %v1208_v22 }
 0x960   :  { %v1214_v26 = vsub.f32 %v3209_v14, %v1212_v23  ;;  %v1217_v27 = vmul.f32 %v1215_v47, %v1215_v47 }
 0x962   :  { %v1221_v45 = vsel %vm178_vm1, %v1217_v27, 0.0  ;;  %v1216_v30 = vmul.f32 %v1214_v26, %v1214_v26 }
 0x963   :  { %1222 = vadd.xlane.f32.xlu1 %v1221_v45 }
 0x964   :  { %v1218_v31 = vsel %vm178_vm1, %v1216_v30, 0.0 }
 0x965   :  { %1219 = vadd.xlane.f32.xlu0 %v1218_v31 }
 0x9ec   :  { %v1223_v41 = vpop.xlane.xlu1 %1222 }
 0x9ed   :  { %v1225_v42 = vmul.f32 0.03125, %v1223_v41 }
 0x9ee   :  { %v1220_v44 = vpop.xlane.xlu0 %1219 }
 0x9ef   :  { %v1227_v46 = vadd.f32 1e-05, %v1225_v42  ;;  %v1224_v48 = vmul.f32 0.03125, %v1220_v44 }
 0x9f1   :  { %2914 = vrsqrt.f32 %v1227_v46  ;;  %v1226_v50 = vadd.f32 1e-05, %v1224_v48 }
 0x9f3   :  { %2916 = vrsqrt.f32 %v1226_v50 }
 0x9fe   :  { %v2915_v51 = vpop.eup %2914 }
 0x9ff   :  { %v1231_v54 = vmul.f32 %v2915_v51, %v1215_v47 }
 0xa00   :  { %v2917_v55 = vpop.eup %2916 }
 0xa01   :  { %v1230_v57 = vmul.f32 %v2917_v55, %v1214_v26  ;;  %v1237_v58 = vmul.f32 %v2411_v52, %v1231_v54 }
 0xa03   :  { %v1236_v60 = vmul.f32 %v2411_v52, %v1230_v57  ;;  %v1243_v63 = vadd.f32 %v2412_v59, %v1237_v58  ;;  %v2416_v57 = vld [vmem:[#allocation2 + $0x270] ss:$0 sm:$0xff] }
 0xa05   :  { %v1242_v62 = vadd.f32 %v2412_v59, %v1236_v60 }
 0xa07   :  { %2722 = vmatprep.mubr.msk.f32.mxu1 %vm178_vm1, %v1242_v62 }
 0xa08   :  { %2723 = vmatmul.mubr.msk.f32.vlgmr.msra.gmra.mxu1 %vm178_vm1, %v1243_v63 }
 0xa09   :  { %2761 = vmatpush3.msra.mxu1 %v1495_v11 }
 0xa0a   :  { %2762 = vmatprep.subr.mxu1 %v1494_v12 }
 0xa0b   :  { %2763 = vmatpush3.msra.mxu1 %v1494_v12 }
 0xa0c   :  { %2764 = vmatprep.subr.mxu1 %v1493_v20 }
 0xa0d   :  { %2765 = vmatpush3.msra.mxu1 %v1493_v20 }
 0xa0e   :  { %2766 = vmatprep.subr.mxu1 %v1492_v17 }
 0xa0f   :  { %2767 = vmatpush3.msra.mxu1 %v1492_v17 }
 0xac8   :  { %v2724_v21 = vpop.f32.mrf.mxu1 }
 0xac9   :  { %v1331_v22 = vadd.f32 %v2724_v21, %v2413_v18 }
 0xaca   :  { %v1325_v47 = vpop.f32.mrf.mxu1 }
 0xacb   :  { %v1335_v23 = vmul.f32 %v1331_v22, %v1331_v22  ;;  %v1326_v26 = vadd.f32 %v2413_v18, %v1325_v47 }
 0xacd   :  { %v1337_v27 = vmul.f32 %v1335_v23, %v1331_v22  ;;  %v1334_v45 = vmul.f32 %v1326_v26, %v1326_v26 }
 0xacf   :  { %v1339_v30 = vmul.f32 0.044715, %v1337_v27  ;;  %v1336_v31 = vmul.f32 %v1334_v45, %v1326_v26 }
 0xad1   :  { %v1341_v34 = vadd.f32 %v1339_v30, %v1331_v22  ;;  %v1338_v35 = vmul.f32 0.044715, %v1336_v31 }
 0xad3   :  { %v1343_v37 = vmul.f32 0.7978846, %v1341_v34  ;;  %v1340_v39 = vadd.f32 %v1338_v35, %v1326_v26  ;;  %v2418_v34 = vld [vmem:[#allocation2 + $0x280] ss:$0 sm:$0xff] }
 0xad5   :  { %2918 = vtanh.f32 %v1343_v37  ;;  %v1342_v41 = vmul.f32 0.7978846, %v1340_v39 }
 0xad7   :  { %2920 = vtanh.f32 %v1342_v41  ;;  %v2419_v41 = vld [vmem:[#allocation2 + $0x2a8] ss:$0 sm:$0xff] }
 0xae2   :  { %v2919_v42 = vpop.eup %2918 }
 0xae3   :  { %v1347_v44 = vadd.f32 1.0, %v2919_v42 }
 0xae4   :  { %v2921_v46 = vpop.eup %2920 }
 0xae5   :  { %v1346_v48 = vadd.f32 1.0, %v2921_v46  ;;  %v1349_v50 = vmul.f32 0.5, %v1347_v44 }
 0xae7   :  { %v1348_v51 = vmul.f32 0.5, %v1346_v48  ;;  %v1351_v54 = vmul.f32 %v1349_v50, %v1331_v22 }
 0xae9   :  { %v1350_v52 = vmul.f32 %v1348_v51, %v1326_v26  ;;  %v2417_v26 = vld [vmem:[#allocation2 + $0x278] ss:$0 sm:$0xff] }
 0xaeb   :  { %2757 = vmatprep.mubr.f32.mxu0 %v1350_v52 }
 0xaec   :  { %2758 = vmatmul.mubr.f32.vlgmr.msra.gmra.mxu0 %v1351_v54 }
 0xbac   :  { %v2759_v55 = vpop.f32.mrf.mxu0 }
 0xbad   :  { %v1444_v58 = vadd.f32 %v2759_v55, %v3206_v13 }
 0xbae   :  { %v1434_v59 = vpop.f32.mrf.mxu0 }
 0xbaf   :  { %v3222_v60 = vadd.f32 %v2416_v57, %v1444_v58  ;;  %v1443_v62 = vadd.f32 %v1434_v59, %v3209_v14 }
 0xbb1   :  { %v3225_v63 = vadd.f32 %v2416_v57, %v1443_v62  ;;  %v1457_v1 = vsel %vm178_vm1, %v3222_v60, 0.0 }
 0xbb2   :  { %1458 = vadd.xlane.f32.xlu1 %v1457_v1 }
 0xbb3   :  { %v1454_v2 = vsel %vm178_vm1, %v3225_v63, 0.0 }
 0xbb4   :  { %1455 = vadd.xlane.f32.xlu0 %v1454_v2 }
 0xc3b   :  { %v1459_v3 = vpop.xlane.xlu1 %1458 }
 0xc3c   :  { %v1461_v4 = vmul.f32 0.03125, %v1459_v3 }
 0xc3d   :  { %v1456_v5 = vpop.xlane.xlu0 %1455 }
 0xc3e   :  { %v1463_v13 = vsub.f32 %v3222_v60, %v1461_v4  ;;  %v1460_v6 = vmul.f32 0.03125, %v1456_v5 }
 0xc40   :  { %v1462_v7 = vsub.f32 %v3225_v63, %v1460_v6  ;;  %v1465_v8 = vmul.f32 %v1463_v13, %v1463_v13 }
 0xc42   :  { %v1469_v14 = vsel %vm178_vm1, %v1465_v8, 0.0  ;;  %v1464_v9 = vmul.f32 %v1462_v7, %v1462_v7 }
 0xc43   :  { %1470 = vadd.xlane.f32.xlu1 %v1469_v14 }
 0xc44   :  { %v1466_v10 = vsel %vm178_vm1, %v1464_v9, 0.0 }
 0xc45   :  { %1467 = vadd.xlane.f32.xlu0 %v1466_v10 }
 0xccc   :  { %v1471_v15 = vpop.xlane.xlu1 %1470 }
 0xccd   :  { %v1473_v16 = vmul.f32 0.03125, %v1471_v15 }
 0xcce   :  { %v1468_v18 = vpop.xlane.xlu0 %1467 }
 0xccf   :  { %v1475_v21 = vadd.f32 1e-05, %v1473_v16  ;;  %v1472_v22 = vmul.f32 0.03125, %v1468_v18 }
 0xcd1   :  { %2922 = vrsqrt.f32 %v1475_v21  ;;  %v1474_v47 = vadd.f32 1e-05, %v1472_v22 }
 0xcd3   :  { %2924 = vrsqrt.f32 %v1474_v47 }
 0xcde   :  { %v2923_v23 = vpop.eup %2922 }
 0xcdf   :  { %v1479_v27 = vmul.f32 %v2923_v23, %v1463_v13 }
 0xce0   :  { %v2925_v45 = vpop.eup %2924 }
 0xce1   :  { %v1478_v30 = vmul.f32 %v2925_v45, %v1462_v7  ;;  %v1485_v31 = vmul.f32 %v2417_v26, %v1479_v27 }
 0xce3   :  { %v1484_v35 = vmul.f32 %v2417_v26, %v1478_v30  ;;  %v1491_v39 = vadd.f32 %v2418_v34, %v1485_v31 }
 0xce5   :  { %v1490_v37 = vadd.f32 %v2418_v34, %v1484_v35 }
 0xce7   :  { %2768 = vmatprep.mubr.msk.f32.mxu1 %vm178_vm1, %v1490_v37 }
 0xce8   :  { %2769 = vmatmul.mubr.msk.f32.vlgmr.msra.gmra.mxu1 %vm178_vm1, %v1491_v39 }
 0xda8   :  { %v2770_v42 = vpop.f32.mrf.mxu1 }
 0xda9   :  { %v3237_v44 = vadd.f32 %v2770_v42, %v2419_v41 }
 0xdaa   :  { %v1573_v46 = vpop.f32.mrf.mxu1 }
 0xdab   :  { %v3239_v48 = vadd.f32 %v2419_v41, %v1573_v46  ;;  %1594 = vrot.lane.b32.xlu0 %v3237_v44, %s3025_s0  ;;  %v1583_v54 = vmul.f32 %v3237_v44, %v3107_v24  ;;  %v1587_v24 = vmul.f32 %v3237_v44, %v3126_v32 }
 0xdad   :  { %1592 = vrot.lane.b32.xlu1 %v3239_v48, %s3025_s0  ;;  %v1582_v50 = vmul.f32 %v3239_v48, %v3093_v19  ;;  %v1584_v55 = vmul.f32 %v3239_v48, %v3109_v25  ;;  %v1585_v19 = vmul.f32 %v3237_v44, %v3116_v28  ;;  %v1586_v57 = vmul.f32 %v3239_v48, %v3119_v29 }
 0xdae   :  { %v1588_v25 = vmul.f32 %v3239_v48, %v3129_v33  ;;  %v1589_v28 = vmul.f32 %v3237_v44, %v3136_v36 }
 0xdaf   :  { %2775 = vmatprep.mubr.msk.f32.mxu1 %vm178_vm1, %v1582_v50 }
 0xe1d   :  { %v1595_v51 = vpop.permute.xlu0 %1594 }
 0xe1e   :  { %2771 = vmatprep.subr.msk.mxu1 %vm178_vm1, %v1595_v51 }
 0xe1f   :  { %2772 = vmatpush3.xpose.msk.msra.mxu1 %vm178_vm1, %v1595_v51  ;;  %v1593_v52 = vpop.permute.xlu1 %1592 }
 0xe20   :  { %2773 = vmatprep.subr.msk.mxu1 %vm178_vm1, %v1593_v52 }
 0xe23   :  { %2774 = vmatpush3.xpose.msk.msra.mxu1 %vm178_vm1, %v1593_v52 }
 0xe26   :  { %2776 = vmatmul.mubr.msk.f32.vlgmr.msra.gmra.mxu1 %vm178_vm1, %v1583_v54 }
 0xe27   :  { %2778 = vmatprep.mubr.msk.f32.mxu1 %vm178_vm1, %v1584_v55 }
 0xe2a   :  { %2779 = vmatmul.mubr.msk.f32.gmra.mxu1 %vm178_vm1, %v1585_v19 }
 0xe2b   :  { %2781 = vmatprep.mubr.msk.f32.mxu1 %vm178_vm1, %v1586_v57 }
 0xe2e   :  { %2782 = vmatmul.mubr.msk.f32.gmra.mxu1 %vm178_vm1, %v1587_v24 }
 0xe2f   :  { %2784 = vmatprep.mubr.msk.f32.mxu1 %vm178_vm1, %v1588_v25 }
 0xe32   :  { %2785 = vmatmul.mubr.msk.f32.gmra.mxu1 %vm178_vm1, %v1589_v28 }
 0xee6   :  { %v2777_v29 = vpop.f32.mrf.mxu1 }
 0xee7   :  { %v1696_v58 = vadd.f32 %v2777_v29, %v3143_v38 }
 0xee8   :  { %v1690_v59 = vpop.f32.mrf.mxu1 }
 0xee9   :  { %v1691_v62 = vadd.f32 %v1690_v59, %v3145_v40  ;;  %v1732_v32 = vsel %vm872_vm2, %v1696_v58, -inf }
 0xeea   :  { %1733 = vmax.xlane.f32.xlu0 %v1732_v32  ;;  %v2780_v1 = vpop.f32.mrf.mxu1 }
 0xeeb   :  { %v1706_v33 = vadd.f32 %v2780_v1, %v3148_v43  ;;  %v1729_v2 = vsel %vm872_vm2, %v1691_v62, -inf }
 0xeec   :  { %v1700_v3 = vpop.f32.mrf.mxu1  ;;  %1730 = vmax.xlane.f32.xlu1 %v1729_v2 }
 0xeed   :  { %v1701_v36 = vadd.f32 %v1700_v3, %v3152_v49  ;;  %v1738_v13 = vsel %vm872_vm2, %v1706_v33, -inf }
 0xeee   :  { %v2783_v4 = vpop.f32.mrf.mxu1 }
 0xeef   :  { %v1716_v5 = vadd.f32 %v2783_v4, %v3156_v53  ;;  %v1735_v38 = vsel %vm872_vm2, %v1701_v36, -inf }
 0xef0   :  { %v1710_v40 = vpop.f32.mrf.mxu1  ;;  %1736 = vmax.xlane.f32.xlu0 %v1735_v38  ;;  %1739 = vmax.xlane.f32.xlu1 %v1738_v13 }
 0xef1   :  { %v1711_v6 = vadd.f32 %v1710_v40, %v3159_v56  ;;  %v1744_v14 = vsel %vm872_vm2, %v1716_v5, -inf }
 0xef2   :  { %v2786_v7 = vpop.f32.mrf.mxu1 }
 0xef3   :  { %v1726_v43 = vadd.f32 %v2786_v7, %v3164_v61  ;;  %v1741_v8 = vsel %vm872_vm2, %v1711_v6, -inf }
 0xef4   :  { %v1720_v49 = vpop.f32.mrf.mxu1  ;;  %1742 = vmax.xlane.f32.xlu0 %v1741_v8  ;;  %1745 = vmax.xlane.f32.xlu1 %v1744_v14 }
 0xef5   :  { %v1721_v53 = vadd.f32 %v1720_v49, %v3167_v0  ;;  %v1750_v10 = vsel %vm872_vm2, %v1726_v43, -inf }
 0xef7   :  { %v1747_v9 = vsel %vm872_vm2, %v1721_v53, -inf }
 0xef8   :  { %1748 = vmax.xlane.f32.xlu0 %v1747_v9  ;;  %1751 = vmax.xlane.f32.xlu1 %v1750_v10 }
 0xf73   :  { %v1734_v11 = vpop.xlane.xlu0 %1733 }
 0xf74   :  { %v1754_v56 = vsub.f32 %v1696_v58, %v1734_v11 }
 0xf75   :  { %v1731_v12 = vpop.xlane.xlu1 %1730 }
 0xf76   :  { %v1763_v20 = vmul.f32 1.442695, %v1754_v56  ;;  %v1753_v61 = vsub.f32 %v1691_v62, %v1731_v12 }
 0xf78   :  { %2926 = vpow2.f32 %v1763_v20  ;;  %v1761_v17 = vmul.f32 1.442695, %v1753_v61  ;;  %v1969_v61 = vld [vmem:[#allocation2 + $0x2c8] sm:$0xff] }
 0xf79   :  { %v1737_v15 = vpop.xlane.xlu0 %1736  ;;  %v1740_v16 = vpop.xlane.xlu1 %1739  ;;  %2803 = vmatprep.subr.mxu0 %v1969_v61 }
 0xf7a   :  { %2928 = vpow2.f32 %v1761_v17  ;;  %v1755_v18 = vsub.f32 %v1701_v36, %v1737_v15  ;;  %v1756_v21 = vsub.f32 %v1706_v33, %v1740_v16  ;;  %2804 = vmatpush3.msra.mxu0 %v1969_v61  ;;  %v1968_v17 = vld [vmem:[#allocation2 + $0x2c0] sm:$0xff]  ;;  %v1967_v15 = vld [vmem:[#allocation2 + $0x2b8] sm:$0xff]  ;;  %v1966_v16 = vld [vmem:[#allocation2 + $0x2b0] sm:$0xff] }
 0xf7b   :  { %2805 = vmatprep.subr.mxu0 %v1968_v17  ;;  %v2443_v61 = vld [vmem:[#allocation2 + $0x2d8] ss:$0 sm:$0xff] }
 0xf7c   :  { %v1765_v22 = vmul.f32 1.442695, %v1755_v18  ;;  %v1767_v0 = vmul.f32 1.442695, %v1756_v21  ;;  %2806 = vmatpush3.msra.mxu0 %v1968_v17 }
 0xf7d   :  { %v1743_v47 = vpop.xlane.xlu0 %1742  ;;  %v1746_v23 = vpop.xlane.xlu1 %1745  ;;  %2807 = vmatprep.subr.mxu0 %v1967_v15 }
 0xf7e   :  { %2930 = vpow2.f32 %v1765_v22  ;;  %v1757_v26 = vsub.f32 %v1711_v6, %v1743_v47  ;;  %v1758_v27 = vsub.f32 %v1716_v5, %v1746_v23  ;;  %2808 = vmatpush3.msra.mxu0 %v1967_v15  ;;  %v2970_v23 = vld [vmem:[#allocation2 + $0xd8] sm:$0xff] }
 0xf7f   :  { %2932 = vpow2.f32 %v1767_v0  ;;  %2809 = vmatprep.subr.mxu0 %v1966_v16 }
 0xf80   :  { %v1769_v45 = vmul.f32 1.442695, %v1757_v26  ;;  %v1771_v30 = vmul.f32 1.442695, %v1758_v27  ;;  %2810 = vmatpush3.msra.mxu0 %v1966_v16  ;;  %v2971_v27 = vld [vmem:[#allocation2 + $0xe0] sm:$0xff] }
 0xf81   :  { %v1749_v31 = vpop.xlane.xlu0 %1748  ;;  %v1752_v34 = vpop.xlane.xlu1 %1751 }
 0xf82   :  { %2934 = vpow2.f32 %v1769_v45  ;;  %v1759_v35 = vsub.f32 %v1721_v53, %v1749_v31  ;;  %v1760_v37 = vsub.f32 %v1726_v43, %v1752_v34  ;;  %v2972_v31 = vld [vmem:[#allocation2 + $0xc8] sm:$0xff] }
 0xf83   :  { %2936 = vpow2.f32 %v1771_v30 }
 0xf84   :  { %v1773_v39 = vmul.f32 1.442695, %v1759_v35  ;;  %v1775_v41 = vmul.f32 1.442695, %v1760_v37  ;;  %v2973_v35 = vld [vmem:[#allocation2 + $0xe8] sm:$0xff] }
 0xf85   :  { %v2927_v42 = vpop.eup %2926 }
 0xf86   :  { %2938 = vpow2.f32 %v1773_v39  ;;  %v1780_v46 = vsel %vm872_vm2, %v2927_v42, 0.0  ;;  %v2974_v39 = vld [vmem:[#allocation2 + $0xd0] sm:$0xff] }
 0xf87   :  { %v2929_v50 = vpop.eup %2928  ;;  %2940 = vpow2.f32 %v1775_v41  ;;  %1781 = vadd.xlane.f32.xlu1 %v1780_v46 }
 0xf88   :  { %v1777_v51 = vsel %vm872_vm2, %v2929_v50, 0.0 }
 0xf89   :  { %1778 = vadd.xlane.f32.xlu0 %v1777_v51 }
 0xf8b   :  { %v2931_v52 = vpop.eup %2930 }
 0xf8c   :  { %v2933_v54 = vpop.eup %2932  ;;  %v1783_v55 = vsel %vm872_vm2, %v2931_v52, 0.0 }
 0xf8d   :  { %1784 = vadd.xlane.f32.xlu0 %v1783_v55  ;;  %v1786_v19 = vsel %vm872_vm2, %v2933_v54, 0.0 }
 0xf8e   :  { %1787 = vadd.xlane.f32.xlu1 %v1786_v19 }
 0xf8f   :  { %v2935_v57 = vpop.eup %2934 }
 0xf90   :  { %v2937_v24 = vpop.eup %2936  ;;  %v1789_v25 = vsel %vm872_vm2, %v2935_v57, 0.0 }
 0xf91   :  { %1790 = vadd.xlane.f32.xlu0 %v1789_v25  ;;  %v1792_v28 = vsel %vm872_vm2, %v2937_v24, 0.0 }
 0xf92   :  { %1793 = vadd.xlane.f32.xlu1 %v1792_v28 }
 0xf93   :  { %v2939_v29 = vpop.eup %2938 }
 0xf94   :  { %v2941_v58 = vpop.eup %2940  ;;  %v1795_v59 = vsel %vm872_vm2, %v2939_v29, 0.0 }
 0xf95   :  { %1796 = vadd.xlane.f32.xlu0 %v1795_v59  ;;  %v1798_v62 = vsel %vm872_vm2, %v2941_v58, 0.0 }
 0xf96   :  { %1799 = vadd.xlane.f32.xlu1 %v1798_v62  ;;  %v2442_v62 = vld [vmem:[#allocation2 + $0x2d0] ss:$0 sm:$0xff] }
 0xfa7   :  { %1817 = vrot.lane.b32.xlu1 %v3239_v48, %s3026_s23 }
 0xfab   :  { %1819 = vrot.lane.b32.xlu0 %v3237_v44, %s3026_s23 }
0x1010   :  { %v1782_v32 = vpop.xlane.xlu1 %1781 }
0x1012   :  { %v1779_v1 = vpop.xlane.xlu0 %1778 }
0x1013   :  { %2942 = vrcp.f32 %v1779_v1 }
0x1014   :  { %2944 = vrcp.f32 %v1782_v32 }
0x1016   :  { %v1785_v33 = vpop.xlane.xlu0 %1784 }
0x1017   :  { %2946 = vrcp.f32 %v1785_v33  ;;  %v1788_v2 = vpop.xlane.xlu1 %1787 }
0x1018   :  { %2948 = vrcp.f32 %v1788_v2 }
0x101a   :  { %v1791_v3 = vpop.xlane.xlu0 %1790 }
0x101b   :  { %2950 = vrcp.f32 %v1791_v3  ;;  %v1794_v36 = vpop.xlane.xlu1 %1793 }
0x101c   :  { %2952 = vrcp.f32 %v1794_v36 }
0x101e   :  { %v1797_v4 = vpop.xlane.xlu0 %1796 }
0x101f   :  { %2954 = vrcp.f32 %v1797_v4  ;;  %v1800_v5 = vpop.xlane.xlu1 %1799 }
0x1020   :  { %v2943_v38 = vpop.eup %2942  ;;  %2956 = vrcp.f32 %v1800_v5 }
0x1021   :  { %v1809_v48 = vmul.f32 %v2943_v38, %v2929_v50  ;;  %v2945_v13 = vpop.eup %2944 }
0x1022   :  { %v1820_v44 = vpop.permute.xlu0 %1819  ;;  %v1810_v7 = vmul.f32 %v2945_v13, %v2927_v42  ;;  %v2975_v42 = vld [vmem:[#allocation2 + $0xf0] sm:$0xff] }
0x1023   :  { %2787 = vmatprep.subr.mxu1 %v1820_v44  ;;  %2791 = vmatprep.mubr.msk.f32.mxu1 %vm872_vm2, %v1809_v48  ;;  %v1818_v6 = vpop.permute.xlu1 %1817 }
0x1024   :  { %v2947_v40 = vpop.eup %2946  ;;  %2788 = vmatpush3.msra.mxu1 %v1820_v44 }
0x1025   :  { %2789 = vmatprep.subr.mxu1 %v1818_v6  ;;  %v1811_v43 = vmul.f32 %v2947_v40, %v2931_v52  ;;  %v2949_v8 = vpop.eup %2948 }
0x1026   :  { %2790 = vmatpush3.msra.mxu1 %v1818_v6  ;;  %v1812_v49 = vmul.f32 %v2949_v8, %v2933_v54  ;;  %v2976_v54 = vld [vmem:[#allocation2 + $0x100] sm:$0xff]  ;;  %v2102_v8 = vld [vmem:[#allocation2 + $0x2f8] sm:$0xff] }
0x1027   :  { %2792 = vmatmul.mubr.msk.f32.vlgmr.msra.gmra.mxu1 %vm872_vm2, %v1810_v7 }
0x1028   :  { %v2951_v14 = vpop.eup %2950  ;;  %2794 = vmatprep.mubr.msk.f32.mxu1 %vm872_vm2, %v1811_v43  ;;  %v2103_v43 = vld [vmem:[#allocation2 + $0x300] sm:$0xff] }
0x1029   :  { %v1813_v53 = vmul.f32 %v2951_v14, %v2935_v57  ;;  %v2953_v9 = vpop.eup %2952  ;;  %2814 = vmatprep.subr.mxu0 %v2103_v43  ;;  %v2101_v14 = vld [vmem:[#allocation2 + $0x2f0] sm:$0xff] }
0x102a   :  { %v1814_v11 = vmul.f32 %v2953_v9, %v2937_v24  ;;  %v2977_v24 = vld [vmem:[#allocation2 + $0xf8] sm:$0xff] }
0x102b   :  { %2795 = vmatmul.mubr.msk.f32.gmra.mxu1 %vm872_vm2, %v1812_v49  ;;  %v2100_v49 = vld [vmem:[#allocation2 + $0x2e8] sm:$0xff] }
0x102c   :  { %v2955_v10 = vpop.eup %2954  ;;  %2797 = vmatprep.mubr.msk.f32.mxu1 %vm872_vm2, %v1813_v53 }
0x102d   :  { %v1815_v56 = vmul.f32 %v2955_v10, %v2939_v29  ;;  %v2957_v12 = vpop.eup %2956 }
0x102e   :  { %v1816_v20 = vmul.f32 %v2957_v12, %v2941_v58 }
0x102f   :  { %2798 = vmatmul.mubr.msk.f32.gmra.mxu1 %vm872_vm2, %v1814_v11 }
0x1030   :  { %2800 = vmatprep.mubr.msk.f32.mxu1 %vm872_vm2, %v1815_v56 }
0x1033   :  { %2801 = vmatmul.mubr.msk.f32.gmra.mxu1 %vm872_vm2, %v1816_v20 }
0x10e7   :  { %v2793_v18 = vpop.f32.mrf.mxu1 }
0x10e8   :  { %v1953_v41 = vmul.f32 %v2974_v39, %v2793_v18  ;;  %v2214_v39 = vld [vmem:[#allocation2 + $0x340] sm:$0xff] }
0x10e9   :  { %v1913_v21 = vpop.f32.mrf.mxu1 }
0x10ea   :  { %v1952_v34 = vmul.f32 %v2972_v31, %v1913_v21  ;;  %v2444_v21 = vld [vmem:[#allocation2 + $0x2e0] ss:$0 sm:$0xff] }
0x10eb   :  { %v2796_v22 = vpop.f32.mrf.mxu1  ;;  %v2218_v31 = vld [vmem:[#allocation2 + $0x360] sm:$0xff] }
0x10ec   :  { %v1955_v45 = vmul.f32 %v2971_v27, %v2796_v22  ;;  %v2221_v27 = vld [vmem:[#allocation2 + $0x378] sm:$0xff] }
0x10ed   :  { %v1923_v0 = vpop.f32.mrf.mxu1 }
0x10ee   :  { %v1954_v26 = vmul.f32 %v2970_v23, %v1923_v0  ;;  %v1961_v52 = vadd.f32 %v1955_v45, %v1953_v41  ;;  %v2223_v23 = vld [vmem:[#allocation2 + $0x388] sm:$0xff]  ;;  %v2220_v45 = vld [vmem:[#allocation2 + $0x370] sm:$0xff]  ;;  %v2213_v41 = vld [vmem:[#allocation2 + $0x338] sm:$0xff] }
0x10ef   :  { %v2799_v47 = vpop.f32.mrf.mxu1  ;;  %2825 = vmatprep.subr.mxu1 %v2223_v23 }
0x10f0   :  { %v1957_v46 = vmul.f32 %v2975_v42, %v2799_v47  ;;  %v1960_v51 = vadd.f32 %v1954_v26, %v1952_v34  ;;  %2826 = vmatpush3.msra.mxu1 %v2223_v23  ;;  %v2222_v26 = vld [vmem:[#allocation2 + $0x380] sm:$0xff]  ;;  %v2217_v34 = vld [vmem:[#allocation2 + $0x358] sm:$0xff]  ;;  %v2212_v42 = vld [vmem:[#allocation2 + $0x330] sm:$0xff] }
0x10f1   :  { %v1933_v30 = vpop.f32.mrf.mxu1  ;;  %2827 = vmatprep.subr.mxu1 %v2222_v26 }
0x10f2   :  { %v1956_v37 = vmul.f32 %v2973_v35, %v1933_v30  ;;  %v1963_v28 = vadd.f32 %v1961_v52, %v1957_v46  ;;  %2828 = vmatpush3.msra.mxu1 %v2222_v26  ;;  %v2219_v30 = vld [vmem:[#allocation2 + $0x368] sm:$0xff]  ;;  %v2216_v35 = vld [vmem:[#allocation2 + $0x350] sm:$0xff] }
0x10f3   :  { %v2802_v50 = vpop.f32.mrf.mxu1  ;;  %2829 = vmatprep.subr.mxu1 %v2221_v27  ;;  %v2211_v46 = vld [vmem:[#allocation2 + $0x328] sm:$0xff]  ;;  %v2208_v52 = vld [vmem:[#allocation2 + $0x310] sm:$0xff] }
0x10f4   :  { %v1959_v55 = vmul.f32 %v2976_v54, %v2802_v50  ;;  %v1962_v57 = vadd.f32 %v1960_v51, %v1956_v37  ;;  %2830 = vmatpush3.msra.mxu1 %v2221_v27  ;;  %v2215_v37 = vld [vmem:[#allocation2 + $0x348] sm:$0xff]  ;;  %v2210_v50 = vld [vmem:[#allocation2 + $0x320] sm:$0xff]  ;;  %v2209_v51 = vld [vmem:[#allocation2 + $0x318] sm:$0xff] }
0x10f5   :  { %v1943_v19 = vpop.f32.mrf.mxu1  ;;  %2831 = vmatprep.subr.mxu1 %v2220_v45  ;;  %v2445_v54 = vld [vmem:[#allocation2 + $0x308] ss:$0 sm:$0xff] }
0x10f6   :  { %v1958_v25 = vmul.f32 %v2977_v24, %v1943_v19  ;;  %v1965_v58 = vadd.f32 %v1963_v28, %v1959_v55  ;;  %2832 = vmatpush3.msra.mxu1 %v2220_v45  ;;  %v2449_v26 = vld [vmem:[#allocation2 + $0x148] ss:$0 sm:$0xff] }
0x10f7   :  { %2833 = vmatprep.subr.mxu1 %v2219_v30 }
0x10f8   :  { %v1964_v29 = vadd.f32 %v1962_v57, %v1958_v25  ;;  %2834 = vmatpush3.msra.mxu1 %v2219_v30  ;;  %v2450_v30 = vld [vmem:[#allocation2 + $0x150] ss:$0 sm:$0xff] }
0x10f9   :  { %2835 = vmatprep.subr.mxu1 %v2218_v31 }
0x10fa   :  { %2811 = vmatprep.mubr.msk.f32.mxu0 %vm178_vm1, %v1964_v29  ;;  %2836 = vmatpush3.msra.mxu1 %v2218_v31 }
0x10fb   :  { %2812 = vmatmul.mubr.msk.f32.vlgmr.msra.gmra.mxu0 %vm178_vm1, %v1965_v58  ;;  %2837 = vmatprep.subr.mxu1 %v2217_v34 }
0x10fc   :  { %2815 = vmatpush3.msra.mxu0 %v2103_v43  ;;  %2838 = vmatpush3.msra.mxu1 %v2217_v34 }
0x10fd   :  { %2816 = vmatprep.subr.mxu0 %v2102_v8  ;;  %2839 = vmatprep.subr.mxu1 %v2216_v35 }
0x10fe   :  { %2817 = vmatpush3.msra.mxu0 %v2102_v8  ;;  %2840 = vmatpush3.msra.mxu1 %v2216_v35 }
0x10ff   :  { %2818 = vmatprep.subr.mxu0 %v2101_v14  ;;  %2841 = vmatprep.subr.mxu1 %v2215_v37 }
0x1100   :  { %2819 = vmatpush3.msra.mxu0 %v2101_v14  ;;  %2842 = vmatpush3.msra.mxu1 %v2215_v37 }
0x1101   :  { %2820 = vmatprep.subr.mxu0 %v2100_v49  ;;  %2843 = vmatprep.subr.mxu1 %v2214_v39 }
0x1102   :  { %2821 = vmatpush3.msra.mxu0 %v2100_v49  ;;  %2844 = vmatpush3.msra.mxu1 %v2214_v39 }
0x1103   :  { %2845 = vmatprep.subr.mxu1 %v2213_v41 }
0x1104   :  { %2846 = vmatpush3.msra.mxu1 %v2213_v41 }
0x1105   :  { %2847 = vmatprep.subr.mxu1 %v2212_v42 }
0x1106   :  { %2848 = vmatpush3.msra.mxu1 %v2212_v42 }
0x1107   :  { %2849 = vmatprep.subr.mxu1 %v2211_v46 }
0x1108   :  { %2850 = vmatpush3.msra.mxu1 %v2211_v46 }
0x1109   :  { %2851 = vmatprep.subr.mxu1 %v2210_v50 }
0x110a   :  { %2852 = vmatpush3.msra.mxu1 %v2210_v50 }
0x110b   :  { %2853 = vmatprep.subr.mxu1 %v2209_v51 }
0x110c   :  { %2854 = vmatpush3.msra.mxu1 %v2209_v51 }
0x110d   :  { %2855 = vmatprep.subr.mxu1 %v2208_v52 }
0x110e   :  { %2856 = vmatpush3.msra.mxu1 %v2208_v52 }
0x11bb   :  { %v2813_v59 = vpop.f32.mrf.mxu0 }
0x11bc   :  { %v2052_v32 = vadd.f32 %v2813_v59, %v3222_v60 }
0x11bd   :  { %v2042_v1 = vpop.f32.mrf.mxu0 }
0x11be   :  { %v3312_v33 = vadd.f32 %v2442_v62, %v2052_v32  ;;  %v2051_v2 = vadd.f32 %v2042_v1, %v3225_v63 }
0x11c0   :  { %v3315_v3 = vadd.f32 %v2442_v62, %v2051_v2  ;;  %v2065_v36 = vsel %vm178_vm1, %v3312_v33, 0.0 }
0x11c1   :  { %2066 = vadd.xlane.f32.xlu0 %v2065_v36 }
0x11c2   :  { %v2062_v4 = vsel %vm178_vm1, %v3315_v3, 0.0 }
0x11c3   :  { %2063 = vadd.xlane.f32.xlu1 %v2062_v4 }
0x124a   :  { %v2067_v5 = vpop.xlane.xlu0 %2066 }
0x124b   :  { %v2069_v38 = vmul.f32 0.03125, %v2067_v5 }
0x124c   :  { %v2064_v48 = vpop.xlane.xlu1 %2063 }
0x124d   :  { %v2071_v60 = vsub.f32 %v3312_v33, %v2069_v38  ;;  %v2068_v13 = vmul.f32 0.03125, %v2064_v48 }
0x124f   :  { %v2070_v44 = vsub.f32 %v3315_v3, %v2068_v13  ;;  %v2073_v40 = vmul.f32 %v2071_v60, %v2071_v60 }
0x1251   :  { %v2077_v63 = vsel %vm178_vm1, %v2073_v40, 0.0  ;;  %v2072_v6 = vmul.f32 %v2070_v44, %v2070_v44 }
0x1252   :  { %2078 = vadd.xlane.f32.xlu1 %v2077_v63 }
0x1253   :  { %v2074_v7 = vsel %vm178_vm1, %v2072_v6, 0.0  ;;  %v2448_v6 = vld [vmem:[#allocation2 + $0x390] ss:$0 sm:$0xff] }
0x1254   :  { %2075 = vadd.xlane.f32.xlu0 %v2074_v7 }
0x12db   :  { %v2079_v53 = vpop.xlane.xlu1 %2078 }
0x12dc   :  { %v2081_v9 = vmul.f32 0.03125, %v2079_v53 }
0x12dd   :  { %v2076_v10 = vpop.xlane.xlu0 %2075 }
0x12de   :  { %v2083_v11 = vadd.f32 1e-05, %v2081_v9  ;;  %v2080_v56 = vmul.f32 0.03125, %v2076_v10 }
0x12e0   :  { %2958 = vrsqrt.f32 %v2083_v11  ;;  %v2082_v12 = vadd.f32 1e-05, %v2080_v56 }
0x12e2   :  { %2960 = vrsqrt.f32 %v2082_v12 }
0x12ed   :  { %v2959_v20 = vpop.eup %2958 }
0x12ee   :  { %v2087_v17 = vmul.f32 %v2959_v20, %v2071_v60 }
0x12ef   :  { %v2961_v15 = vpop.eup %2960 }
0x12f0   :  { %v2086_v16 = vmul.f32 %v2961_v15, %v2070_v44  ;;  %v2093_v18 = vmul.f32 %v2443_v61, %v2087_v17 }
0x12f2   :  { %v2092_v22 = vmul.f32 %v2443_v61, %v2086_v16  ;;  %v2099_v47 = vadd.f32 %v2444_v21, %v2093_v18 }
0x12f4   :  { %v2098_v0 = vadd.f32 %v2444_v21, %v2092_v22 }
0x12f6   :  { %2822 = vmatprep.mubr.msk.f32.mxu0 %vm178_vm1, %v2098_v0 }
0x12f7   :  { %2823 = vmatmul.mubr.msk.f32.vlgmr.msra.gmra.mxu0 %vm178_vm1, %v2099_v47 }
0x13b7   :  { %v2824_v55 = vpop.f32.mrf.mxu0 }
0x13b8   :  { %v2187_v19 = vadd.f32 %v2824_v55, %v2445_v54 }
0x13b9   :  { %v2181_v57 = vpop.f32.mrf.mxu0 }
0x13ba   :  { %v2191_v24 = vmul.f32 %v2187_v19, %v2187_v19  ;;  %v2182_v25 = vadd.f32 %v2445_v54, %v2181_v57 }
0x13bc   :  { %v2193_v28 = vmul.f32 %v2191_v24, %v2187_v19  ;;  %v2190_v29 = vmul.f32 %v2182_v25, %v2182_v25 }
0x13be   :  { %v2195_v58 = vmul.f32 0.044715, %v2193_v28  ;;  %v2192_v59 = vmul.f32 %v2190_v29, %v2182_v25 }
0x13c0   :  { %v2197_v62 = vadd.f32 %v2195_v58, %v2187_v19  ;;  %v2194_v32 = vmul.f32 0.044715, %v2192_v59 }
0x13c2   :  { %v2199_v1 = vmul.f32 0.7978846, %v2197_v62  ;;  %v2196_v2 = vadd.f32 %v2194_v32, %v2182_v25 }
0x13c4   :  { %2962 = vtanh.f32 %v2199_v1  ;;  %v2198_v36 = vmul.f32 0.7978846, %v2196_v2 }
0x13c6   :  { %2964 = vtanh.f32 %v2198_v36 }
0x13d1   :  { %v2963_v4 = vpop.eup %2962 }
0x13d2   :  { %v2203_v5 = vadd.f32 1.0, %v2963_v4 }
0x13d3   :  { %v2965_v38 = vpop.eup %2964 }
0x13d4   :  { %v2202_v48 = vadd.f32 1.0, %v2965_v38  ;;  %v2205_v60 = vmul.f32 0.5, %v2203_v5 }
0x13d6   :  { %v2204_v13 = vmul.f32 0.5, %v2202_v48  ;;  %v2207_v40 = vmul.f32 %v2205_v60, %v2187_v19 }
0x13d8   :  { %v2206_v44 = vmul.f32 %v2204_v13, %v2182_v25 }
0x13da   :  { %2857 = vmatprep.mubr.f32.mxu1 %v2206_v44 }
0x13db   :  { %2858 = vmatmul.mubr.f32.vlgmr.msra.gmra.mxu1 %v2207_v40 }
0x149b   :  { %v2859_v63 = vpop.f32.mrf.mxu1 }
0x149c   :  { %v2300_v7 = vadd.f32 %v2859_v63, %v3312_v33 }
0x149d   :  { %v2290_v43 = vpop.f32.mrf.mxu1 }
0x149e   :  { %v2299_v8 = vadd.f32 %v2290_v43, %v3315_v3  ;;  %v2307_v14 = vadd.f32 %v2448_v6, %v2300_v7 }
0x14a0   :  { %v2313_v49 = vsel %vm178_vm1, %v2307_v14, 0.0  ;;  %v2306_v53 = vadd.f32 %v2448_v6, %v2299_v8 }
0x14a1   :  { %2314 = vadd.xlane.f32.xlu1 %v2313_v49 }
0x14a2   :  { %v2310_v9 = vsel %vm178_vm1, %v2306_v53, 0.0 }
0x14a3   :  { %2311 = vadd.xlane.f32.xlu0 %v2310_v9 }
0x152a   :  { %v2315_v10 = vpop.xlane.xlu1 %2314 }
0x152b   :  { %v2317_v11 = vmul.f32 0.03125, %v2315_v10 }
0x152c   :  { %v2312_v56 = vpop.xlane.xlu0 %2311 }
0x152d   :  { %v2319_v12 = vsub.f32 %v2307_v14, %v2317_v11  ;;  %v2316_v20 = vmul.f32 0.03125, %v2312_v56 }
0x152f   :  { %v2318_v61 = vsub.f32 %v2306_v53, %v2316_v20  ;;  %v2321_v17 = vmul.f32 %v2319_v12, %v2319_v12 }
0x1531   :  { %v2325_v33 = vsel %vm178_vm1, %v2321_v17, 0.0  ;;  %v2320_v15 = vmul.f32 %v2318_v61, %v2318_v61 }
0x1532   :  { %2326 = vadd.xlane.f32.xlu1 %v2325_v33 }
0x1533   :  { %v2322_v3 = vsel %vm178_vm1, %v2320_v15, 0.0 }
0x1534   :  { %2323 = vadd.xlane.f32.xlu0 %v2322_v3 }
0x15bb   :  { %v2327_v16 = vpop.xlane.xlu1 %2326 }
0x15bc   :  { %v2329_v18 = vmul.f32 0.03125, %v2327_v16 }
0x15bd   :  { %v2324_v21 = vpop.xlane.xlu0 %2323 }
0x15be   :  { %v2331_v22 = vadd.f32 1e-05, %v2329_v18  ;;  %v2328_v0 = vmul.f32 0.03125, %v2324_v21 }
0x15c0   :  { %2966 = vrsqrt.f32 %v2331_v22  ;;  %v2330_v47 = vadd.f32 1e-05, %v2328_v0 }
0x15c2   :  { %2968 = vrsqrt.f32 %v2330_v47 }
0x15cd   :  { %v2967_v23 = vpop.eup %2966 }
0x15ce   :  { %v2335_v27 = vmul.f32 %v2967_v23, %v2319_v12 }
0x15cf   :  { %v2969_v45 = vpop.eup %2968 }
0x15d0   :  { %v2334_v31 = vmul.f32 %v2969_v45, %v2318_v61  ;;  %v2341_v34 = vmul.f32 %v2449_v26, %v2335_v27 }
0x15d2   :  { %v2340_v35 = vmul.f32 %v2449_v26, %v2334_v31  ;;  %v2347_v37 = vadd.f32 %v2450_v30, %v2341_v34 }
0x15d4   :  { %v2346_v39 = vadd.f32 %v2450_v30, %v2340_v35  ;;  %2349 = vst.msk [vmem:[#allocation5 + $0x8] sm:$0xff] %vm178_vm1, %v2347_v37 }
0x15d6   :  { %2348 = vst.msk [vmem:[#allocation5] sm:$0xff] %vm178_vm1, %v2346_v39 }
0x15d7   :  { %3009 = shalt.err (!%p3006_p9)
}
0x15d8   :  { %2361 = dma.vmem_to_hbm [thread:$0]  %s2356_s25, 256, %s3343_s2, [#allocation4], %s3023_s12, %s3023_s12, %s3024_s13  }
0x15d9   :  { %3020 = dma.done.wait [#allocation4], 256  }
0x15da   :  { %3021 = vsyncadd [#allocation4], 4294967040 }
0x15db   :  { %2365 = vsyncpa [#allocation3], 1 }
0x15dc   :  { %2366 = vsyncpa [#allocation4], 1 }

</bundles_post_ra>
